<compile_context>
chip_gen: v6e
topology: v6e:2x2x1
jax: 0.10.0
libtpu: 0.0.40
codegen_flags: <defaults>
</compile_context>

<pallas_src>
import functools

import jax
import jax.numpy as jnp
from jax.experimental import pallas as pl
from jax.experimental.pallas import tpu as pltpu

EPS = 1e-5    # BatchNorm1d default eps
LANE = 128    # lane-dense width for the padded final output


def _full_spec(shape):
    nd = len(shape)
    return pl.BlockSpec(shape, lambda *_, nd=nd: (0,) * nd)


# ---------------------------------------------------------------------------
# Fully fused forward kernel
# ---------------------------------------------------------------------------
def _make_fused_kernel(num_layers, clf_num_layers):
    def kernel(*refs):
        it = iter(refs)
        x_ref, adj_ref = next(it), next(it)
        enc_wT, enc_b, enc_g, enc_bt = next(it), next(it), next(it), next(it)
        sage = [(next(it), next(it), next(it)) for _ in range(num_layers)]
        jk_ws = [next(it) for _ in range(num_layers)]
        jk_b = next(it)
        clf = [(next(it), next(it), next(it), next(it))
               for _ in range(clf_num_layers)]
        out_wT, out_b = next(it), next(it)
        o_ref = next(it)

        def mm(a_f32, w_ref):
            # bf16 operands -> MXU, f32 accumulation.
            return jnp.dot(a_f32.astype(jnp.bfloat16), w_ref[...],
                           preferred_element_type=jnp.float32)

        def batchnorm(h, g_ref, bt_ref):
            # training-mode BatchNorm1d: biased batch statistics over the full
            # node axis (valid: entire N is resident in this single kernel).
            mean = jnp.mean(h, axis=0, keepdims=True)
            var = jnp.mean(jnp.square(h - mean), axis=0, keepdims=True)
            return (h - mean) * jax.lax.rsqrt(var + EPS) * g_ref[...] + bt_ref[...]

        adj = adj_ref[...]                                  # [N, N] bf16

        # --- encoder: Linear + BatchNorm (no activation) -------------------
        h = mm(x_ref[...], enc_wT) + enc_b[...]
        h = batchnorm(h, enc_g, enc_bt)

        # --- GraphSAGE (mean aggregation), jk='cat' ------------------------
        # BasicGNN with jk='cat' applies ReLU after every conv layer; the cat
        # projection is folded in as a running sum of per-layer projections.
        jk = jk_b[...]
        for k in range(num_layers):
            wl_T, bl, wr_T = sage[k]
            h_bf = h.astype(jnp.bfloat16)
            xw_l = jnp.dot(h_bf, wl_T[...], preferred_element_type=jnp.float32)
            xw_r = jnp.dot(h_bf, wr_T[...], preferred_element_type=jnp.float32)
            # reassociated: A @ (X @ W_l^T) == (A @ X) @ W_l^T
            h = (jnp.dot(adj, xw_l.astype(jnp.bfloat16),
                         preferred_element_type=jnp.float32)
                 + bl[...] + xw_r)
            h = jnp.maximum(h, 0.0)
            jk = jk + mm(h, jk_ws[k])
        h = jk

        # --- classifier head: clf_num_layers x (Linear -> BN -> ReLU) ------
        for w_T, b, g, bt in clf:
            h = mm(h, w_T) + b[...]
            h = batchnorm(h, g, bt)
            h = jnp.maximum(h, 0.0)

        # --- final Linear(out_ch -> 1) + sigmoid ----------------------------
        # Weight/bias are zero-padded to LANE columns so the only HBM store is
        # lane-dense and unmasked; column 0 carries the real logit.
        h = mm(h, out_wT) + out_b[...]                      # [N, LANE]
        sig = pl.reciprocal(1.0 + jnp.exp(-h), approx=True)  # EUP rcp
        o_ref[...] = jnp.clip(sig, 0.0, 1.0)                 # guard approx err

    return kernel


# ---------------------------------------------------------------------------
# Host-side parameter packing (pre-transpose, bf16 cast, lane padding)
# ---------------------------------------------------------------------------
def _prepare_inputs(params, x, adj, num_layers, clf_num_layers):
    bf = jnp.bfloat16
    flat = [x, adj.astype(bf)]
    flat += [params["enc_w"].T.astype(bf),
             params["enc_b"].reshape(1, -1),
             params["enc_bn_g"], params["enc_bn_b"]]
    for lw in params["sage_layers"]:
        flat += [lw["w_l"].T.astype(bf),
                 lw["b_l"].reshape(1, -1),
                 lw["w_r"].T.astype(bf)]
    hid = params["sage_layers"][0]["w_l"].shape[0]
    jk_wT = params["jk_lin_w"].T.astype(bf)       # [hid * num_layers, out_ch]
    for k in range(num_layers):
        flat.append(jk_wT[k * hid:(k + 1) * hid, :])
    flat.append(params["jk_lin_b"].reshape(1, -1))
    for lw in params["clf_layers"]:
        flat += [lw["w"].T.astype(bf), lw["b"].reshape(1, -1), lw["g"], lw["bt"]]
    out_ch = params["out_w"].shape[1]
    out_wT = jnp.zeros((out_ch, LANE), bf).at[:, 0].set(
        params["out_w"][0].astype(bf))
    out_b = jnp.zeros((1, LANE), jnp.float32).at[0, 0].set(params["out_b"][0])
    flat += [out_wT, out_b]
    return flat


@functools.partial(jax.jit, static_argnames=("num_layers", "clf_num_layers"))
def graphsage_clf_forward(params, x, adj, *, num_layers, clf_num_layers):
    N = x.shape[0]
    flat = _prepare_inputs(params, x, adj, num_layers, clf_num_layers)
    kernel = _make_fused_kernel(num_layers, clf_num_layers)
    out = pl.pallas_call(
        kernel,
        out_shape=jax.ShapeDtypeStruct((N, LANE), jnp.float32),
        grid=(1,),
        in_specs=[_full_spec(a.shape) for a in flat],
        out_specs=_full_spec((N, LANE)),
        compiler_params=pltpu.CompilerParams(
            dimension_semantics=("arbitrary",),
            vmem_limit_bytes=32 * 1024 * 1024,
        ),
    )(*flat)
    return out[:, :1]


# ---------------------------------------------------------------------------
# Graph / parameter construction
# ---------------------------------------------------------------------------
def build_mean_adj(edge_index, num_nodes):
    """Row-normalized adjacency so that A @ X = mean over in-neighbors (PyG
    SAGEConv default aggr='mean', flow source->target). Isolated nodes -> 0."""
    src, dst = edge_index[0], edge_index[1]
    a = jnp.zeros((num_nodes, num_nodes), jnp.float32).at[dst, src].add(1.0)
    deg = jnp.sum(a, axis=1, keepdims=True)
    return a / jnp.maximum(deg, 1.0)


def _xavier_uniform(key, out_f, in_f):
    bound = (6.0 / (in_f + out_f)) ** 0.5
    return jax.random.uniform(key, (out_f, in_f), jnp.float32, -bound, bound)


def _bias(key, out_f, in_f):
    bound = 1.0 / (in_f ** 0.5)
    return jax.random.uniform(key, (out_f,), jnp.float32, -bound, bound)


def init_params(key, in_ch, enc_ch, hid_ch, num_layers, out_ch, clf_num_layers):
    keys = iter(jax.random.split(key, 64))
    p = {}
    # encoder Linear + BatchNorm
    p["enc_w"] = _xavier_uniform(next(keys), enc_ch, in_ch)
    p["enc_b"] = _bias(next(keys), enc_ch, in_ch)
    p["enc_bn_g"] = jnp.ones((1, enc_ch), jnp.float32)
    p["enc_bn_b"] = jnp.zeros((1, enc_ch), jnp.float32)
    # GraphSAGE convs
    p["sage_layers"] = []
    fin = enc_ch
    for _ in range(num_layers):
        p["sage_layers"].append(
            dict(
                w_l=_xavier_uniform(next(keys), hid_ch, fin),
                b_l=_bias(next(keys), hid_ch, fin),
                w_r=_xavier_uniform(next(keys), hid_ch, fin),
            )
        )
        fin = hid_ch
    # JumpingKnowledge 'cat' projection
    p["jk_lin_w"] = _xavier_uniform(next(keys), out_ch, hid_ch * num_layers)
    p["jk_lin_b"] = _bias(next(keys), out_ch, hid_ch * num_layers)
    # classifier MLP
    p["clf_layers"] = []
    for _ in range(clf_num_layers):
        p["clf_layers"].append(
            dict(
                w=_xavier_uniform(next(keys), out_ch, out_ch),
                b=_bias(next(keys), out_ch, out_ch),
                g=jnp.ones((1, out_ch), jnp.float32),
                bt=jnp.zeros((1, out_ch), jnp.float32),
            )
        )
    p["out_w"] = _xavier_uniform(next(keys), 1, out_ch)
    p["out_b"] = _bias(next(keys), 1, out_ch)
    return p


if __name__ == "__main__":
    N, E = 64, 256
    in_channels, enc_channels, hidden_channels = 16, 32, 32
    num_layers, out_channels, clf_num_layers = 2, 32, 4

    key = jax.random.PRNGKey(0)
    k_x, k_e, k_p = jax.random.split(key, 3)

    x = jax.random.normal(k_x, (N, in_channels), jnp.float32)
    edge_index = jax.random.randint(k_e, (2, E), 0, N)
    adj = build_mean_adj(edge_index, N)

    params = init_params(
        k_p, in_channels, enc_channels, hidden_channels,
        num_layers, out_channels, clf_num_layers,
    )

    out = graphsage_clf_forward(
        params, x, adj, num_layers=num_layers, clf_num_layers=clf_num_layers,
    )
    out = jax.block_until_ready(out)

    assert out.shape == (N, 1), out.shape
    assert bool(jnp.all(jnp.isfinite(out)))
    assert bool(jnp.all((out >= 0.0) & (out <= 1.0)))
    print("KERNEL_OK")
</pallas_src>

<mosaic_0001>
module attributes {stable_mosaic.version = 11 : i64} {
  func.func @kernel(%arg0: i32, %arg1: memref<64x16xf32, #tpu.memory_space<vmem>>, %arg2: memref<64x64xbf16, #tpu.memory_space<vmem>>, %arg3: memref<16x32xbf16, #tpu.memory_space<vmem>>, %arg4: memref<1x32xf32, #tpu.memory_space<vmem>>, %arg5: memref<1x32xf32, #tpu.memory_space<vmem>>, %arg6: memref<1x32xf32, #tpu.memory_space<vmem>>, %arg7: memref<32x32xbf16, #tpu.memory_space<vmem>>, %arg8: memref<1x32xf32, #tpu.memory_space<vmem>>, %arg9: memref<32x32xbf16, #tpu.memory_space<vmem>>, %arg10: memref<32x32xbf16, #tpu.memory_space<vmem>>, %arg11: memref<1x32xf32, #tpu.memory_space<vmem>>, %arg12: memref<32x32xbf16, #tpu.memory_space<vmem>>, %arg13: memref<32x32xbf16, #tpu.memory_space<vmem>>, %arg14: memref<32x32xbf16, #tpu.memory_space<vmem>>, %arg15: memref<1x32xf32, #tpu.memory_space<vmem>>, %arg16: memref<32x32xbf16, #tpu.memory_space<vmem>>, %arg17: memref<1x32xf32, #tpu.memory_space<vmem>>, %arg18: memref<1x32xf32, #tpu.memory_space<vmem>>, %arg19: memref<1x32xf32, #tpu.memory_space<vmem>>, %arg20: memref<32x32xbf16, #tpu.memory_space<vmem>>, %arg21: memref<1x32xf32, #tpu.memory_space<vmem>>, %arg22: memref<1x32xf32, #tpu.memory_space<vmem>>, %arg23: memref<1x32xf32, #tpu.memory_space<vmem>>, %arg24: memref<32x32xbf16, #tpu.memory_space<vmem>>, %arg25: memref<1x32xf32, #tpu.memory_space<vmem>>, %arg26: memref<1x32xf32, #tpu.memory_space<vmem>>, %arg27: memref<1x32xf32, #tpu.memory_space<vmem>>, %arg28: memref<32x32xbf16, #tpu.memory_space<vmem>>, %arg29: memref<1x32xf32, #tpu.memory_space<vmem>>, %arg30: memref<1x32xf32, #tpu.memory_space<vmem>>, %arg31: memref<1x32xf32, #tpu.memory_space<vmem>>, %arg32: memref<32x128xbf16, #tpu.memory_space<vmem>>, %arg33: memref<1x128xf32, #tpu.memory_space<vmem>>, %arg34: memref<64x128xf32, #tpu.memory_space<vmem>>) attributes {dimension_semantics = [#tpu.dimension_semantics<arbitrary>], iteration_bounds = array<i64: 1>, scalar_prefetch = 0 : i64, scratch_operands = 0 : i64, tpu.core_type = #tpu.core_type<tc>, window_params = [{pipeline_mode = #tpu.pipeline_mode<synchronous>, transform_indices = @transform_0, window_bounds = array<i64: 64, 16>}, {pipeline_mode = #tpu.pipeline_mode<synchronous>, transform_indices = @transform_1, window_bounds = array<i64: 64, 64>}, {pipeline_mode = #tpu.pipeline_mode<synchronous>, transform_indices = @transform_2, window_bounds = array<i64: 16, 32>}, {pipeline_mode = #tpu.pipeline_mode<synchronous>, transform_indices = @transform_3, window_bounds = array<i64: 1, 32>}, {pipeline_mode = #tpu.pipeline_mode<synchronous>, transform_indices = @transform_4, window_bounds = array<i64: 1, 32>}, {pipeline_mode = #tpu.pipeline_mode<synchronous>, transform_indices = @transform_5, window_bounds = array<i64: 1, 32>}, {pipeline_mode = #tpu.pipeline_mode<synchronous>, transform_indices = @transform_6, window_bounds = array<i64: 32, 32>}, {pipeline_mode = #tpu.pipeline_mode<synchronous>, transform_indices = @transform_7, window_bounds = array<i64: 1, 32>}, {pipeline_mode = #tpu.pipeline_mode<synchronous>, transform_indices = @transform_8, window_bounds = array<i64: 32, 32>}, {pipeline_mode = #tpu.pipeline_mode<synchronous>, transform_indices = @transform_9, window_bounds = array<i64: 32, 32>}, {pipeline_mode = #tpu.pipeline_mode<synchronous>, transform_indices = @transform_10, window_bounds = array<i64: 1, 32>}, {pipeline_mode = #tpu.pipeline_mode<synchronous>, transform_indices = @transform_11, window_bounds = array<i64: 32, 32>}, {pipeline_mode = #tpu.pipeline_mode<synchronous>, transform_indices = @transform_12, window_bounds = array<i64: 32, 32>}, {pipeline_mode = #tpu.pipeline_mode<synchronous>, transform_indices = @transform_13, window_bounds = array<i64: 32, 32>}, {pipeline_mode = #tpu.pipeline_mode<synchronous>, transform_indices = @transform_14, window_bounds = array<i64: 1, 32>}, {pipeline_mode = #tpu.pipeline_mode<synchronous>, transform_indices = @transform_15, window_bounds = array<i64: 32, 32>}, {pipeline_mode = #tpu.pipeline_mode<synchronous>, transform_indices = @transform_16, window_bounds = array<i64: 1, 32>}, {pipeline_mode = #tpu.pipeline_mode<synchronous>, transform_indices = @transform_17, window_bounds = array<i64: 1, 32>}, {pipeline_mode = #tpu.pipeline_mode<synchronous>, transform_indices = @transform_18, window_bounds = array<i64: 1, 32>}, {pipeline_mode = #tpu.pipeline_mode<synchronous>, transform_indices = @transform_19, window_bounds = array<i64: 32, 32>}, {pipeline_mode = #tpu.pipeline_mode<synchronous>, transform_indices = @transform_20, window_bounds = array<i64: 1, 32>}, {pipeline_mode = #tpu.pipeline_mode<synchronous>, transform_indices = @transform_21, window_bounds = array<i64: 1, 32>}, {pipeline_mode = #tpu.pipeline_mode<synchronous>, transform_indices = @transform_22, window_bounds = array<i64: 1, 32>}, {pipeline_mode = #tpu.pipeline_mode<synchronous>, transform_indices = @transform_23, window_bounds = array<i64: 32, 32>}, {pipeline_mode = #tpu.pipeline_mode<synchronous>, transform_indices = @transform_24, window_bounds = array<i64: 1, 32>}, {pipeline_mode = #tpu.pipeline_mode<synchronous>, transform_indices = @transform_25, window_bounds = array<i64: 1, 32>}, {pipeline_mode = #tpu.pipeline_mode<synchronous>, transform_indices = @transform_26, window_bounds = array<i64: 1, 32>}, {pipeline_mode = #tpu.pipeline_mode<synchronous>, transform_indices = @transform_27, window_bounds = array<i64: 32, 32>}, {pipeline_mode = #tpu.pipeline_mode<synchronous>, transform_indices = @transform_28, window_bounds = array<i64: 1, 32>}, {pipeline_mode = #tpu.pipeline_mode<synchronous>, transform_indices = @transform_29, window_bounds = array<i64: 1, 32>}, {pipeline_mode = #tpu.pipeline_mode<synchronous>, transform_indices = @transform_30, window_bounds = array<i64: 1, 32>}, {pipeline_mode = #tpu.pipeline_mode<synchronous>, transform_indices = @transform_31, window_bounds = array<i64: 32, 128>}, {pipeline_mode = #tpu.pipeline_mode<synchronous>, transform_indices = @transform_32, window_bounds = array<i64: 1, 128>}, {pipeline_mode = #tpu.pipeline_mode<synchronous>, transform_indices = @transform_33, window_bounds = array<i64: 64, 128>}]} {
    %c0 = arith.constant 0 : index
    %c0_0 = arith.constant 0 : index
    %0 = vector.load %arg2[%c0, %c0_0] : memref<64x64xbf16, #tpu.memory_space<vmem>>, vector<64x64xbf16>
    %c0_1 = arith.constant 0 : index
    %c0_2 = arith.constant 0 : index
    %1 = vector.load %arg1[%c0_1, %c0_2] : memref<64x16xf32, #tpu.memory_space<vmem>>, vector<64x16xf32>
    %2 = arith.truncf %1 : vector<64x16xf32> to vector<64x16xbf16>
    %c0_3 = arith.constant 0 : index
    %c0_4 = arith.constant 0 : index
    %3 = vector.load %arg3[%c0_3, %c0_4] : memref<16x32xbf16, #tpu.memory_space<vmem>>, vector<16x32xbf16>
    %cst = arith.constant dense<0.000000e+00> : vector<64x32xf32>
    %4 = tpu.matmul %2, %3, %cst {dimension_numbers = #tpu.dot_dimension_numbers<[1], [0], [0], [1], [0, 0, 1, 1], [], []>} : vector<64x16xbf16>, vector<16x32xbf16>, vector<64x32xf32> -> vector<64x32xf32>
    %c0_5 = arith.constant 0 : index
    %c0_6 = arith.constant 0 : index
    %5 = vector.load %arg4[%c0_5, %c0_6] : memref<1x32xf32, #tpu.memory_space<vmem>>, vector<1x32xf32>
    %6 = vector.broadcast %5 : vector<1x32xf32> to vector<64x32xf32>
    %7 = arith.addf %4, %6 : vector<64x32xf32>
    %cst_7 = arith.constant dense<0.000000e+00> : vector<32xf32>
    %8 = vector.multi_reduction <add>, %7, %cst_7 [0] : vector<64x32xf32> to vector<32xf32>
    %9 = vector.shape_cast %8 : vector<32xf32> to vector<1x32xf32>
    %cst_8 = arith.constant 6.400000e+01 : f32
    %10 = vector.broadcast %cst_8 : f32 to vector<1x32xf32>
    %11 = arith.divf %9, %10 : vector<1x32xf32>
    %12 = vector.broadcast %11 : vector<1x32xf32> to vector<64x32xf32>
    %13 = arith.subf %7, %12 : vector<64x32xf32>
    %14 = arith.mulf %13, %13 : vector<64x32xf32>
    %cst_9 = arith.constant dense<0.000000e+00> : vector<32xf32>
    %15 = vector.multi_reduction <add>, %14, %cst_9 [0] : vector<64x32xf32> to vector<32xf32>
    %16 = vector.shape_cast %15 : vector<32xf32> to vector<1x32xf32>
    %cst_10 = arith.constant 6.400000e+01 : f32
    %17 = vector.broadcast %cst_10 : f32 to vector<1x32xf32>
    %18 = arith.divf %16, %17 : vector<1x32xf32>
    %19 = vector.broadcast %11 : vector<1x32xf32> to vector<64x32xf32>
    %20 = arith.subf %7, %19 : vector<64x32xf32>
    %cst_11 = arith.constant 9.99999974E-6 : f32
    %21 = vector.broadcast %cst_11 : f32 to vector<1x32xf32>
    %22 = arith.addf %18, %21 : vector<1x32xf32>
    %23 = math.rsqrt %22 : vector<1x32xf32>
    %24 = vector.broadcast %23 : vector<1x32xf32> to vector<64x32xf32>
    %25 = arith.mulf %20, %24 : vector<64x32xf32>
    %c0_12 = arith.constant 0 : index
    %c0_13 = arith.constant 0 : index
    %26 = vector.load %arg5[%c0_12, %c0_13] : memref<1x32xf32, #tpu.memory_space<vmem>>, vector<1x32xf32>
    %27 = vector.broadcast %26 : vector<1x32xf32> to vector<64x32xf32>
    %28 = arith.mulf %25, %27 : vector<64x32xf32>
    %c0_14 = arith.constant 0 : index
    %c0_15 = arith.constant 0 : index
    %29 = vector.load %arg6[%c0_14, %c0_15] : memref<1x32xf32, #tpu.memory_space<vmem>>, vector<1x32xf32>
    %30 = vector.broadcast %29 : vector<1x32xf32> to vector<64x32xf32>
    %31 = arith.addf %28, %30 : vector<64x32xf32>
    %c0_16 = arith.constant 0 : index
    %c0_17 = arith.constant 0 : index
    %32 = vector.load %arg15[%c0_16, %c0_17] : memref<1x32xf32, #tpu.memory_space<vmem>>, vector<1x32xf32>
    %33 = arith.truncf %31 : vector<64x32xf32> to vector<64x32xbf16>
    %c0_18 = arith.constant 0 : index
    %c0_19 = arith.constant 0 : index
    %34 = vector.load %arg7[%c0_18, %c0_19] : memref<32x32xbf16, #tpu.memory_space<vmem>>, vector<32x32xbf16>
    %cst_20 = arith.constant dense<0.000000e+00> : vector<64x32xf32>
    %35 = tpu.matmul %33, %34, %cst_20 {dimension_numbers = #tpu.dot_dimension_numbers<[1], [0], [0], [1], [0, 0, 1, 1], [], []>} : vector<64x32xbf16>, vector<32x32xbf16>, vector<64x32xf32> -> vector<64x32xf32>
    %c0_21 = arith.constant 0 : index
    %c0_22 = arith.constant 0 : index
    %36 = vector.load %arg9[%c0_21, %c0_22] : memref<32x32xbf16, #tpu.memory_space<vmem>>, vector<32x32xbf16>
    %cst_23 = arith.constant dense<0.000000e+00> : vector<64x32xf32>
    %37 = tpu.matmul %33, %36, %cst_23 {dimension_numbers = #tpu.dot_dimension_numbers<[1], [0], [0], [1], [0, 0, 1, 1], [], []>} : vector<64x32xbf16>, vector<32x32xbf16>, vector<64x32xf32> -> vector<64x32xf32>
    %38 = arith.truncf %35 : vector<64x32xf32> to vector<64x32xbf16>
    %cst_24 = arith.constant dense<0.000000e+00> : vector<64x32xf32>
    %39 = tpu.matmul %0, %38, %cst_24 {dimension_numbers = #tpu.dot_dimension_numbers<[1], [0], [0], [1], [0, 0, 1, 1], [], []>} : vector<64x64xbf16>, vector<64x32xbf16>, vector<64x32xf32> -> vector<64x32xf32>
    %c0_25 = arith.constant 0 : index
    %c0_26 = arith.constant 0 : index
    %40 = vector.load %arg8[%c0_25, %c0_26] : memref<1x32xf32, #tpu.memory_space<vmem>>, vector<1x32xf32>
    %41 = vector.broadcast %40 : vector<1x32xf32> to vector<64x32xf32>
    %42 = arith.addf %39, %41 : vector<64x32xf32>
    %43 = arith.addf %42, %37 : vector<64x32xf32>
    %cst_27 = arith.constant 0.000000e+00 : f32
    %44 = vector.broadcast %cst_27 : f32 to vector<64x32xf32>
    %45 = arith.maximumf %43, %44 : vector<64x32xf32>
    %46 = arith.truncf %45 : vector<64x32xf32> to vector<64x32xbf16>
    %c0_28 = arith.constant 0 : index
    %c0_29 = arith.constant 0 : index
    %47 = vector.load %arg13[%c0_28, %c0_29] : memref<32x32xbf16, #tpu.memory_space<vmem>>, vector<32x32xbf16>
    %cst_30 = arith.constant dense<0.000000e+00> : vector<64x32xf32>
    %48 = tpu.matmul %46, %47, %cst_30 {dimension_numbers = #tpu.dot_dimension_numbers<[1], [0], [0], [1], [0, 0, 1, 1], [], []>} : vector<64x32xbf16>, vector<32x32xbf16>, vector<64x32xf32> -> vector<64x32xf32>
    %49 = vector.broadcast %32 : vector<1x32xf32> to vector<64x32xf32>
    %50 = arith.addf %49, %48 : vector<64x32xf32>
    %51 = arith.truncf %45 : vector<64x32xf32> to vector<64x32xbf16>
    %c0_31 = arith.constant 0 : index
    %c0_32 = arith.constant 0 : index
    %52 = vector.load %arg10[%c0_31, %c0_32] : memref<32x32xbf16, #tpu.memory_space<vmem>>, vector<32x32xbf16>
    %cst_33 = arith.constant dense<0.000000e+00> : vector<64x32xf32>
    %53 = tpu.matmul %51, %52, %cst_33 {dimension_numbers = #tpu.dot_dimension_numbers<[1], [0], [0], [1], [0, 0, 1, 1], [], []>} : vector<64x32xbf16>, vector<32x32xbf16>, vector<64x32xf32> -> vector<64x32xf32>
    %c0_34 = arith.constant 0 : index
    %c0_35 = arith.constant 0 : index
    %54 = vector.load %arg12[%c0_34, %c0_35] : memref<32x32xbf16, #tpu.memory_space<vmem>>, vector<32x32xbf16>
    %cst_36 = arith.constant dense<0.000000e+00> : vector<64x32xf32>
    %55 = tpu.matmul %51, %54, %cst_36 {dimension_numbers = #tpu.dot_dimension_numbers<[1], [0], [0], [1], [0, 0, 1, 1], [], []>} : vector<64x32xbf16>, vector<32x32xbf16>, vector<64x32xf32> -> vector<64x32xf32>
    %56 = arith.truncf %53 : vector<64x32xf32> to vector<64x32xbf16>
    %cst_37 = arith.constant dense<0.000000e+00> : vector<64x32xf32>
    %57 = tpu.matmul %0, %56, %cst_37 {dimension_numbers = #tpu.dot_dimension_numbers<[1], [0], [0], [1], [0, 0, 1, 1], [], []>} : vector<64x64xbf16>, vector<64x32xbf16>, vector<64x32xf32> -> vector<64x32xf32>
    %c0_38 = arith.constant 0 : index
    %c0_39 = arith.constant 0 : index
    %58 = vector.load %arg11[%c0_38, %c0_39] : memref<1x32xf32, #tpu.memory_space<vmem>>, vector<1x32xf32>
    %59 = vector.broadcast %58 : vector<1x32xf32> to vector<64x32xf32>
    %60 = arith.addf %57, %59 : vector<64x32xf32>
    %61 = arith.addf %60, %55 : vector<64x32xf32>
    %cst_40 = arith.constant 0.000000e+00 : f32
    %62 = vector.broadcast %cst_40 : f32 to vector<64x32xf32>
    %63 = arith.maximumf %61, %62 : vector<64x32xf32>
    %64 = arith.truncf %63 : vector<64x32xf32> to vector<64x32xbf16>
    %c0_41 = arith.constant 0 : index
    %c0_42 = arith.constant 0 : index
    %65 = vector.load %arg14[%c0_41, %c0_42] : memref<32x32xbf16, #tpu.memory_space<vmem>>, vector<32x32xbf16>
    %cst_43 = arith.constant dense<0.000000e+00> : vector<64x32xf32>
    %66 = tpu.matmul %64, %65, %cst_43 {dimension_numbers = #tpu.dot_dimension_numbers<[1], [0], [0], [1], [0, 0, 1, 1], [], []>} : vector<64x32xbf16>, vector<32x32xbf16>, vector<64x32xf32> -> vector<64x32xf32>
    %67 = arith.addf %50, %66 : vector<64x32xf32>
    %68 = arith.truncf %67 : vector<64x32xf32> to vector<64x32xbf16>
    %c0_44 = arith.constant 0 : index
    %c0_45 = arith.constant 0 : index
    %69 = vector.load %arg16[%c0_44, %c0_45] : memref<32x32xbf16, #tpu.memory_space<vmem>>, vector<32x32xbf16>
    %cst_46 = arith.constant dense<0.000000e+00> : vector<64x32xf32>
    %70 = tpu.matmul %68, %69, %cst_46 {dimension_numbers = #tpu.dot_dimension_numbers<[1], [0], [0], [1], [0, 0, 1, 1], [], []>} : vector<64x32xbf16>, vector<32x32xbf16>, vector<64x32xf32> -> vector<64x32xf32>
    %c0_47 = arith.constant 0 : index
    %c0_48 = arith.constant 0 : index
    %71 = vector.load %arg17[%c0_47, %c0_48] : memref<1x32xf32, #tpu.memory_space<vmem>>, vector<1x32xf32>
    %72 = vector.broadcast %71 : vector<1x32xf32> to vector<64x32xf32>
    %73 = arith.addf %70, %72 : vector<64x32xf32>
    %cst_49 = arith.constant dense<0.000000e+00> : vector<32xf32>
    %74 = vector.multi_reduction <add>, %73, %cst_49 [0] : vector<64x32xf32> to vector<32xf32>
    %75 = vector.shape_cast %74 : vector<32xf32> to vector<1x32xf32>
    %cst_50 = arith.constant 6.400000e+01 : f32
    %76 = vector.broadcast %cst_50 : f32 to vector<1x32xf32>
    %77 = arith.divf %75, %76 : vector<1x32xf32>
    %78 = vector.broadcast %77 : vector<1x32xf32> to vector<64x32xf32>
    %79 = arith.subf %73, %78 : vector<64x32xf32>
    %80 = arith.mulf %79, %79 : vector<64x32xf32>
    %cst_51 = arith.constant dense<0.000000e+00> : vector<32xf32>
    %81 = vector.multi_reduction <add>, %80, %cst_51 [0] : vector<64x32xf32> to vector<32xf32>
    %82 = vector.shape_cast %81 : vector<32xf32> to vector<1x32xf32>
    %cst_52 = arith.constant 6.400000e+01 : f32
    %83 = vector.broadcast %cst_52 : f32 to vector<1x32xf32>
    %84 = arith.divf %82, %83 : vector<1x32xf32>
    %85 = vector.broadcast %77 : vector<1x32xf32> to vector<64x32xf32>
    %86 = arith.subf %73, %85 : vector<64x32xf32>
    %cst_53 = arith.constant 9.99999974E-6 : f32
    %87 = vector.broadcast %cst_53 : f32 to vector<1x32xf32>
    %88 = arith.addf %84, %87 : vector<1x32xf32>
    %89 = math.rsqrt %88 : vector<1x32xf32>
    %90 = vector.broadcast %89 : vector<1x32xf32> to vector<64x32xf32>
    %91 = arith.mulf %86, %90 : vector<64x32xf32>
    %c0_54 = arith.constant 0 : index
    %c0_55 = arith.constant 0 : index
    %92 = vector.load %arg18[%c0_54, %c0_55] : memref<1x32xf32, #tpu.memory_space<vmem>>, vector<1x32xf32>
    %93 = vector.broadcast %92 : vector<1x32xf32> to vector<64x32xf32>
    %94 = arith.mulf %91, %93 : vector<64x32xf32>
    %c0_56 = arith.constant 0 : index
    %c0_57 = arith.constant 0 : index
    %95 = vector.load %arg19[%c0_56, %c0_57] : memref<1x32xf32, #tpu.memory_space<vmem>>, vector<1x32xf32>
    %96 = vector.broadcast %95 : vector<1x32xf32> to vector<64x32xf32>
    %97 = arith.addf %94, %96 : vector<64x32xf32>
    %cst_58 = arith.constant 0.000000e+00 : f32
    %98 = vector.broadcast %cst_58 : f32 to vector<64x32xf32>
    %99 = arith.maximumf %97, %98 : vector<64x32xf32>
    %100 = arith.truncf %99 : vector<64x32xf32> to vector<64x32xbf16>
    %c0_59 = arith.constant 0 : index
    %c0_60 = arith.constant 0 : index
    %101 = vector.load %arg20[%c0_59, %c0_60] : memref<32x32xbf16, #tpu.memory_space<vmem>>, vector<32x32xbf16>
    %cst_61 = arith.constant dense<0.000000e+00> : vector<64x32xf32>
    %102 = tpu.matmul %100, %101, %cst_61 {dimension_numbers = #tpu.dot_dimension_numbers<[1], [0], [0], [1], [0, 0, 1, 1], [], []>} : vector<64x32xbf16>, vector<32x32xbf16>, vector<64x32xf32> -> vector<64x32xf32>
    %c0_62 = arith.constant 0 : index
    %c0_63 = arith.constant 0 : index
    %103 = vector.load %arg21[%c0_62, %c0_63] : memref<1x32xf32, #tpu.memory_space<vmem>>, vector<1x32xf32>
    %104 = vector.broadcast %103 : vector<1x32xf32> to vector<64x32xf32>
    %105 = arith.addf %102, %104 : vector<64x32xf32>
    %cst_64 = arith.constant dense<0.000000e+00> : vector<32xf32>
    %106 = vector.multi_reduction <add>, %105, %cst_64 [0] : vector<64x32xf32> to vector<32xf32>
    %107 = vector.shape_cast %106 : vector<32xf32> to vector<1x32xf32>
    %cst_65 = arith.constant 6.400000e+01 : f32
    %108 = vector.broadcast %cst_65 : f32 to vector<1x32xf32>
    %109 = arith.divf %107, %108 : vector<1x32xf32>
    %110 = vector.broadcast %109 : vector<1x32xf32> to vector<64x32xf32>
    %111 = arith.subf %105, %110 : vector<64x32xf32>
    %112 = arith.mulf %111, %111 : vector<64x32xf32>
    %cst_66 = arith.constant dense<0.000000e+00> : vector<32xf32>
    %113 = vector.multi_reduction <add>, %112, %cst_66 [0] : vector<64x32xf32> to vector<32xf32>
    %114 = vector.shape_cast %113 : vector<32xf32> to vector<1x32xf32>
    %cst_67 = arith.constant 6.400000e+01 : f32
    %115 = vector.broadcast %cst_67 : f32 to vector<1x32xf32>
    %116 = arith.divf %114, %115 : vector<1x32xf32>
    %117 = vector.broadcast %109 : vector<1x32xf32> to vector<64x32xf32>
    %118 = arith.subf %105, %117 : vector<64x32xf32>
    %cst_68 = arith.constant 9.99999974E-6 : f32
    %119 = vector.broadcast %cst_68 : f32 to vector<1x32xf32>
    %120 = arith.addf %116, %119 : vector<1x32xf32>
    %121 = math.rsqrt %120 : vector<1x32xf32>
    %122 = vector.broadcast %121 : vector<1x32xf32> to vector<64x32xf32>
    %123 = arith.mulf %118, %122 : vector<64x32xf32>
    %c0_69 = arith.constant 0 : index
    %c0_70 = arith.constant 0 : index
    %124 = vector.load %arg22[%c0_69, %c0_70] : memref<1x32xf32, #tpu.memory_space<vmem>>, vector<1x32xf32>
    %125 = vector.broadcast %124 : vector<1x32xf32> to vector<64x32xf32>
    %126 = arith.mulf %123, %125 : vector<64x32xf32>
    %c0_71 = arith.constant 0 : index
    %c0_72 = arith.constant 0 : index
    %127 = vector.load %arg23[%c0_71, %c0_72] : memref<1x32xf32, #tpu.memory_space<vmem>>, vector<1x32xf32>
    %128 = vector.broadcast %127 : vector<1x32xf32> to vector<64x32xf32>
    %129 = arith.addf %126, %128 : vector<64x32xf32>
    %cst_73 = arith.constant 0.000000e+00 : f32
    %130 = vector.broadcast %cst_73 : f32 to vector<64x32xf32>
    %131 = arith.maximumf %129, %130 : vector<64x32xf32>
    %132 = arith.truncf %131 : vector<64x32xf32> to vector<64x32xbf16>
    %c0_74 = arith.constant 0 : index
    %c0_75 = arith.constant 0 : index
    %133 = vector.load %arg24[%c0_74, %c0_75] : memref<32x32xbf16, #tpu.memory_space<vmem>>, vector<32x32xbf16>
    %cst_76 = arith.constant dense<0.000000e+00> : vector<64x32xf32>
    %134 = tpu.matmul %132, %133, %cst_76 {dimension_numbers = #tpu.dot_dimension_numbers<[1], [0], [0], [1], [0, 0, 1, 1], [], []>} : vector<64x32xbf16>, vector<32x32xbf16>, vector<64x32xf32> -> vector<64x32xf32>
    %c0_77 = arith.constant 0 : index
    %c0_78 = arith.constant 0 : index
    %135 = vector.load %arg25[%c0_77, %c0_78] : memref<1x32xf32, #tpu.memory_space<vmem>>, vector<1x32xf32>
    %136 = vector.broadcast %135 : vector<1x32xf32> to vector<64x32xf32>
    %137 = arith.addf %134, %136 : vector<64x32xf32>
    %cst_79 = arith.constant dense<0.000000e+00> : vector<32xf32>
    %138 = vector.multi_reduction <add>, %137, %cst_79 [0] : vector<64x32xf32> to vector<32xf32>
    %139 = vector.shape_cast %138 : vector<32xf32> to vector<1x32xf32>
    %cst_80 = arith.constant 6.400000e+01 : f32
    %140 = vector.broadcast %cst_80 : f32 to vector<1x32xf32>
    %141 = arith.divf %139, %140 : vector<1x32xf32>
    %142 = vector.broadcast %141 : vector<1x32xf32> to vector<64x32xf32>
    %143 = arith.subf %137, %142 : vector<64x32xf32>
    %144 = arith.mulf %143, %143 : vector<64x32xf32>
    %cst_81 = arith.constant dense<0.000000e+00> : vector<32xf32>
    %145 = vector.multi_reduction <add>, %144, %cst_81 [0] : vector<64x32xf32> to vector<32xf32>
    %146 = vector.shape_cast %145 : vector<32xf32> to vector<1x32xf32>
    %cst_82 = arith.constant 6.400000e+01 : f32
    %147 = vector.broadcast %cst_82 : f32 to vector<1x32xf32>
    %148 = arith.divf %146, %147 : vector<1x32xf32>
    %149 = vector.broadcast %141 : vector<1x32xf32> to vector<64x32xf32>
    %150 = arith.subf %137, %149 : vector<64x32xf32>
    %cst_83 = arith.constant 9.99999974E-6 : f32
    %151 = vector.broadcast %cst_83 : f32 to vector<1x32xf32>
    %152 = arith.addf %148, %151 : vector<1x32xf32>
    %153 = math.rsqrt %152 : vector<1x32xf32>
    %154 = vector.broadcast %153 : vector<1x32xf32> to vector<64x32xf32>
    %155 = arith.mulf %150, %154 : vector<64x32xf32>
    %c0_84 = arith.constant 0 : index
    %c0_85 = arith.constant 0 : index
    %156 = vector.load %arg26[%c0_84, %c0_85] : memref<1x32xf32, #tpu.memory_space<vmem>>, vector<1x32xf32>
    %157 = vector.broadcast %156 : vector<1x32xf32> to vector<64x32xf32>
    %158 = arith.mulf %155, %157 : vector<64x32xf32>
    %c0_86 = arith.constant 0 : index
    %c0_87 = arith.constant 0 : index
    %159 = vector.load %arg27[%c0_86, %c0_87] : memref<1x32xf32, #tpu.memory_space<vmem>>, vector<1x32xf32>
    %160 = vector.broadcast %159 : vector<1x32xf32> to vector<64x32xf32>
    %161 = arith.addf %158, %160 : vector<64x32xf32>
    %cst_88 = arith.constant 0.000000e+00 : f32
    %162 = vector.broadcast %cst_88 : f32 to vector<64x32xf32>
    %163 = arith.maximumf %161, %162 : vector<64x32xf32>
    %164 = arith.truncf %163 : vector<64x32xf32> to vector<64x32xbf16>
    %c0_89 = arith.constant 0 : index
    %c0_90 = arith.constant 0 : index
    %165 = vector.load %arg28[%c0_89, %c0_90] : memref<32x32xbf16, #tpu.memory_space<vmem>>, vector<32x32xbf16>
    %cst_91 = arith.constant dense<0.000000e+00> : vector<64x32xf32>
    %166 = tpu.matmul %164, %165, %cst_91 {dimension_numbers = #tpu.dot_dimension_numbers<[1], [0], [0], [1], [0, 0, 1, 1], [], []>} : vector<64x32xbf16>, vector<32x32xbf16>, vector<64x32xf32> -> vector<64x32xf32>
    %c0_92 = arith.constant 0 : index
    %c0_93 = arith.constant 0 : index
    %167 = vector.load %arg29[%c0_92, %c0_93] : memref<1x32xf32, #tpu.memory_space<vmem>>, vector<1x32xf32>
    %168 = vector.broadcast %167 : vector<1x32xf32> to vector<64x32xf32>
    %169 = arith.addf %166, %168 : vector<64x32xf32>
    %cst_94 = arith.constant dense<0.000000e+00> : vector<32xf32>
    %170 = vector.multi_reduction <add>, %169, %cst_94 [0] : vector<64x32xf32> to vector<32xf32>
    %171 = vector.shape_cast %170 : vector<32xf32> to vector<1x32xf32>
    %cst_95 = arith.constant 6.400000e+01 : f32
    %172 = vector.broadcast %cst_95 : f32 to vector<1x32xf32>
    %173 = arith.divf %171, %172 : vector<1x32xf32>
    %174 = vector.broadcast %173 : vector<1x32xf32> to vector<64x32xf32>
    %175 = arith.subf %169, %174 : vector<64x32xf32>
    %176 = arith.mulf %175, %175 : vector<64x32xf32>
    %cst_96 = arith.constant dense<0.000000e+00> : vector<32xf32>
    %177 = vector.multi_reduction <add>, %176, %cst_96 [0] : vector<64x32xf32> to vector<32xf32>
    %178 = vector.shape_cast %177 : vector<32xf32> to vector<1x32xf32>
    %cst_97 = arith.constant 6.400000e+01 : f32
    %179 = vector.broadcast %cst_97 : f32 to vector<1x32xf32>
    %180 = arith.divf %178, %179 : vector<1x32xf32>
    %181 = vector.broadcast %173 : vector<1x32xf32> to vector<64x32xf32>
    %182 = arith.subf %169, %181 : vector<64x32xf32>
    %cst_98 = arith.constant 9.99999974E-6 : f32
    %183 = vector.broadcast %cst_98 : f32 to vector<1x32xf32>
    %184 = arith.addf %180, %183 : vector<1x32xf32>
    %185 = math.rsqrt %184 : vector<1x32xf32>
    %186 = vector.broadcast %185 : vector<1x32xf32> to vector<64x32xf32>
    %187 = arith.mulf %182, %186 : vector<64x32xf32>
    %c0_99 = arith.constant 0 : index
    %c0_100 = arith.constant 0 : index
    %188 = vector.load %arg30[%c0_99, %c0_100] : memref<1x32xf32, #tpu.memory_space<vmem>>, vector<1x32xf32>
    %189 = vector.broadcast %188 : vector<1x32xf32> to vector<64x32xf32>
    %190 = arith.mulf %187, %189 : vector<64x32xf32>
    %c0_101 = arith.constant 0 : index
    %c0_102 = arith.constant 0 : index
    %191 = vector.load %arg31[%c0_101, %c0_102] : memref<1x32xf32, #tpu.memory_space<vmem>>, vector<1x32xf32>
    %192 = vector.broadcast %191 : vector<1x32xf32> to vector<64x32xf32>
    %193 = arith.addf %190, %192 : vector<64x32xf32>
    %cst_103 = arith.constant 0.000000e+00 : f32
    %194 = vector.broadcast %cst_103 : f32 to vector<64x32xf32>
    %195 = arith.maximumf %193, %194 : vector<64x32xf32>
    %196 = arith.truncf %195 : vector<64x32xf32> to vector<64x32xbf16>
    %c0_104 = arith.constant 0 : index
    %c0_105 = arith.constant 0 : index
    %197 = vector.load %arg32[%c0_104, %c0_105] : memref<32x128xbf16, #tpu.memory_space<vmem>>, vector<32x128xbf16>
    %cst_106 = arith.constant dense<0.000000e+00> : vector<64x128xf32>
    %198 = tpu.matmul %196, %197, %cst_106 {dimension_numbers = #tpu.dot_dimension_numbers<[1], [0], [0], [1], [0, 0, 1, 1], [], []>} : vector<64x32xbf16>, vector<32x128xbf16>, vector<64x128xf32> -> vector<64x128xf32>
    %c0_107 = arith.constant 0 : index
    %c0_108 = arith.constant 0 : index
    %199 = vector.load %arg33[%c0_107, %c0_108] : memref<1x128xf32, #tpu.memory_space<vmem>>, vector<1x128xf32>
    %200 = vector.broadcast %199 : vector<1x128xf32> to vector<64x128xf32>
    %201 = arith.addf %198, %200 : vector<64x128xf32>
    %cst_109 = arith.constant 0.000000e+00 : f32
    %202 = vector.broadcast %cst_109 : f32 to vector<64x128xf32>
    %203 = arith.subf %202, %201 : vector<64x128xf32>
    %204 = math.exp %203 : vector<64x128xf32>
    %cst_110 = arith.constant 1.000000e+00 : f32
    %205 = vector.broadcast %cst_110 : f32 to vector<64x128xf32>
    %206 = arith.addf %205, %204 : vector<64x128xf32>
    %207 = tpu.reciprocal %206 {approx = true} : vector<64x128xf32> -> vector<64x128xf32>
    %cst_111 = arith.constant 0.000000e+00 : f32
    %cst_112 = arith.constant 1.000000e+00 : f32
    %208 = vector.broadcast %cst_111 : f32 to vector<64x128xf32>
    %209 = arith.maximumf %208, %207 : vector<64x128xf32>
    %210 = vector.broadcast %cst_112 : f32 to vector<64x128xf32>
    %211 = arith.minimumf %210, %209 : vector<64x128xf32>
    %c0_113 = arith.constant 0 : index
    %c0_114 = arith.constant 0 : index
    %212 = vector.load %arg34[%c0_113, %c0_114] : memref<64x128xf32, #tpu.memory_space<vmem>>, vector<64x128xf32>
    tpu.vector_store %arg34[%c0_113, %c0_114], %211 {strides = array<i32>} : memref<64x128xf32, #tpu.memory_space<vmem>>, vector<64x128xf32>,
    return
  }
  func.func @transform_0(%arg0: i32) -> (i32, i32) {
    %c0_i32 = arith.constant 0 : i32
    %c0_i32_0 = arith.constant 0 : i32
    %c0_i32_1 = arith.constant 0 : i32
    return %c0_i32, %c0_i32_0 : i32, i32
  }
  func.func @transform_1(%arg0: i32) -> (i32, i32) {
    %c0_i32 = arith.constant 0 : i32
    %c0_i32_0 = arith.constant 0 : i32
    %c0_i32_1 = arith.constant 0 : i32
    return %c0_i32, %c0_i32_0 : i32, i32
  }
  func.func @transform_2(%arg0: i32) -> (i32, i32) {
    %c0_i32 = arith.constant 0 : i32
    %c0_i32_0 = arith.constant 0 : i32
    %c0_i32_1 = arith.constant 0 : i32
    return %c0_i32, %c0_i32_0 : i32, i32
  }
  func.func @transform_3(%arg0: i32) -> (i32, i32) {
    %c0_i32 = arith.constant 0 : i32
    %c0_i32_0 = arith.constant 0 : i32
    %c0_i32_1 = arith.constant 0 : i32
    return %c0_i32, %c0_i32_0 : i32, i32
  }
  func.func @transform_4(%arg0: i32) -> (i32, i32) {
    %c0_i32 = arith.constant 0 : i32
    %c0_i32_0 = arith.constant 0 : i32
    %c0_i32_1 = arith.constant 0 : i32
    return %c0_i32, %c0_i32_0 : i32, i32
  }
  func.func @transform_5(%arg0: i32) -> (i32, i32) {
    %c0_i32 = arith.constant 0 : i32
    %c0_i32_0 = arith.constant 0 : i32
    %c0_i32_1 = arith.constant 0 : i32
    return %c0_i32, %c0_i32_0 : i32, i32
  }
  func.func @transform_6(%arg0: i32) -> (i32, i32) {
    %c0_i32 = arith.constant 0 : i32
    %c0_i32_0 = arith.constant 0 : i32
    %c0_i32_1 = arith.constant 0 : i32
    return %c0_i32, %c0_i32_0 : i32, i32
  }
  func.func @transform_7(%arg0: i32) -> (i32, i32) {
    %c0_i32 = arith.constant 0 : i32
    %c0_i32_0 = arith.constant 0 : i32
    %c0_i32_1 = arith.constant 0 : i32
    return %c0_i32, %c0_i32_0 : i32, i32
  }
  func.func @transform_8(%arg0: i32) -> (i32, i32) {
    %c0_i32 = arith.constant 0 : i32
    %c0_i32_0 = arith.constant 0 : i32
    %c0_i32_1 = arith.constant 0 : i32
    return %c0_i32, %c0_i32_0 : i32, i32
  }
  func.func @transform_9(%arg0: i32) -> (i32, i32) {
    %c0_i32 = arith.constant 0 : i32
    %c0_i32_0 = arith.constant 0 : i32
    %c0_i32_1 = arith.constant 0 : i32
    return %c0_i32, %c0_i32_0 : i32, i32
  }
  func.func @transform_10(%arg0: i32) -> (i32, i32) {
    %c0_i32 = arith.constant 0 : i32
    %c0_i32_0 = arith.constant 0 : i32
    %c0_i32_1 = arith.constant 0 : i32
    return %c0_i32, %c0_i32_0 : i32, i32
  }
  func.func @transform_11(%arg0: i32) -> (i32, i32) {
    %c0_i32 = arith.constant 0 : i32
    %c0_i32_0 = arith.constant 0 : i32
    %c0_i32_1 = arith.constant 0 : i32
    return %c0_i32, %c0_i32_0 : i32, i32
  }
  func.func @transform_12(%arg0: i32) -> (i32, i32) {
    %c0_i32 = arith.constant 0 : i32
    %c0_i32_0 = arith.constant 0 : i32
    %c0_i32_1 = arith.constant 0 : i32
    return %c0_i32, %c0_i32_0 : i32, i32
  }
  func.func @transform_13(%arg0: i32) -> (i32, i32) {
    %c0_i32 = arith.constant 0 : i32
    %c0_i32_0 = arith.constant 0 : i32
    %c0_i32_1 = arith.constant 0 : i32
    return %c0_i32, %c0_i32_0 : i32, i32
  }
  func.func @transform_14(%arg0: i32) -> (i32, i32) {
    %c0_i32 = arith.constant 0 : i32
    %c0_i32_0 = arith.constant 0 : i32
    %c0_i32_1 = arith.constant 0 : i32
    return %c0_i32, %c0_i32_0 : i32, i32
  }
  func.func @transform_15(%arg0: i32) -> (i32, i32) {
    %c0_i32 = arith.constant 0 : i32
    %c0_i32_0 = arith.constant 0 : i32
    %c0_i32_1 = arith.constant 0 : i32
    return %c0_i32, %c0_i32_0 : i32, i32
  }
  func.func @transform_16(%arg0: i32) -> (i32, i32) {
    %c0_i32 = arith.constant 0 : i32
    %c0_i32_0 = arith.constant 0 : i32
    %c0_i32_1 = arith.constant 0 : i32
    return %c0_i32, %c0_i32_0 : i32, i32
  }
  func.func @transform_17(%arg0: i32) -> (i32, i32) {
    %c0_i32 = arith.constant 0 : i32
    %c0_i32_0 = arith.constant 0 : i32
    %c0_i32_1 = arith.constant 0 : i32
    return %c0_i32, %c0_i32_0 : i32, i32
  }
  func.func @transform_18(%arg0: i32) -> (i32, i32) {
    %c0_i32 = arith.constant 0 : i32
    %c0_i32_0 = arith.constant 0 : i32
    %c0_i32_1 = arith.constant 0 : i32
    return %c0_i32, %c0_i32_0 : i32, i32
  }
  func.func @transform_19(%arg0: i32) -> (i32, i32) {
    %c0_i32 = arith.constant 0 : i32
    %c0_i32_0 = arith.constant 0 : i32
    %c0_i32_1 = arith.constant 0 : i32
    return %c0_i32, %c0_i32_0 : i32, i32
  }
  func.func @transform_20(%arg0: i32) -> (i32, i32) {
    %c0_i32 = arith.constant 0 : i32
    %c0_i32_0 = arith.constant 0 : i32
    %c0_i32_1 = arith.constant 0 : i32
    return %c0_i32, %c0_i32_0 : i32, i32
  }
  func.func @transform_21(%arg0: i32) -> (i32, i32) {
    %c0_i32 = arith.constant 0 : i32
    %c0_i32_0 = arith.constant 0 : i32
    %c0_i32_1 = arith.constant 0 : i32
    return %c0_i32, %c0_i32_0 : i32, i32
  }
  func.func @transform_22(%arg0: i32) -> (i32, i32) {
    %c0_i32 = arith.constant 0 : i32
    %c0_i32_0 = arith.constant 0 : i32
    %c0_i32_1 = arith.constant 0 : i32
    return %c0_i32, %c0_i32_0 : i32, i32
  }
  func.func @transform_23(%arg0: i32) -> (i32, i32) {
    %c0_i32 = arith.constant 0 : i32
    %c0_i32_0 = arith.constant 0 : i32
    %c0_i32_1 = arith.constant 0 : i32
    return %c0_i32, %c0_i32_0 : i32, i32
  }
  func.func @transform_24(%arg0: i32) -> (i32, i32) {
    %c0_i32 = arith.constant 0 : i32
    %c0_i32_0 = arith.constant 0 : i32
    %c0_i32_1 = arith.constant 0 : i32
    return %c0_i32, %c0_i32_0 : i32, i32
  }
  func.func @transform_25(%arg0: i32) -> (i32, i32) {
    %c0_i32 = arith.constant 0 : i32
    %c0_i32_0 = arith.constant 0 : i32
    %c0_i32_1 = arith.constant 0 : i32
    return %c0_i32, %c0_i32_0 : i32, i32
  }
  func.func @transform_26(%arg0: i32) -> (i32, i32) {
    %c0_i32 = arith.constant 0 : i32
    %c0_i32_0 = arith.constant 0 : i32
    %c0_i32_1 = arith.constant 0 : i32
    return %c0_i32, %c0_i32_0 : i32, i32
  }
  func.func @transform_27(%arg0: i32) -> (i32, i32) {
    %c0_i32 = arith.constant 0 : i32
    %c0_i32_0 = arith.constant 0 : i32
    %c0_i32_1 = arith.constant 0 : i32
    return %c0_i32, %c0_i32_0 : i32, i32
  }
  func.func @transform_28(%arg0: i32) -> (i32, i32) {
    %c0_i32 = arith.constant 0 : i32
    %c0_i32_0 = arith.constant 0 : i32
    %c0_i32_1 = arith.constant 0 : i32
    return %c0_i32, %c0_i32_0 : i32, i32
  }
  func.func @transform_29(%arg0: i32) -> (i32, i32) {
    %c0_i32 = arith.constant 0 : i32
    %c0_i32_0 = arith.constant 0 : i32
    %c0_i32_1 = arith.constant 0 : i32
    return %c0_i32, %c0_i32_0 : i32, i32
  }
  func.func @transform_30(%arg0: i32) -> (i32, i32) {
    %c0_i32 = arith.constant 0 : i32
    %c0_i32_0 = arith.constant 0 : i32
    %c0_i32_1 = arith.constant 0 : i32
    return %c0_i32, %c0_i32_0 : i32, i32
  }
  func.func @transform_31(%arg0: i32) -> (i32, i32) {
    %c0_i32 = arith.constant 0 : i32
    %c0_i32_0 = arith.constant 0 : i32
    %c0_i32_1 = arith.constant 0 : i32
    return %c0_i32, %c0_i32_0 : i32, i32
  }
  func.func @transform_32(%arg0: i32) -> (i32, i32) {
    %c0_i32 = arith.constant 0 : i32
    %c0_i32_0 = arith.constant 0 : i32
    %c0_i32_1 = arith.constant 0 : i32
    return %c0_i32, %c0_i32_0 : i32, i32
  }
  func.func @transform_33(%arg0: i32) -> (i32, i32) {
    %c0_i32 = arith.constant 0 : i32
    %c0_i32_0 = arith.constant 0 : i32
    %c0_i32_1 = arith.constant 0 : i32
    return %c0_i32, %c0_i32_0 : i32, i32
  }
}

</mosaic_0001>

<bundles_post_ra>
// kernel: graphsage_clf_forward.1
= control target key start
LH: loop header
LB: loop body
LE: loop exit
PB: predicated region body
PF: predicated region fallthrough
CT: control target
= control target key end

     0   :  { %s2646_s3 = smov 2   ;;  %vm174_vm0 = vcmask 130048   ;;  %s2647_s10 = smov 6   ;;  %vm252_vm1 = vcmask 261120   ;;  %vm564_vm2 = vcmask 523264   ;;  %s2980_s0 = inlined_call_operand.smem [shape: u32[34], index: -1, kind: input, shape index: {}] }
   0x1   :  { %s2149_s6 = sld [smem:[%s2980_s0 + %s2646_s3]]   ;;  %s2648_s14 = smov 8  }
   0x2   :  { %s1_s9 = sld [smem:[%s2980_s0]]   ;;  %s2649_s18 = smov 3  }
   0x3   :  { %s2153_s13 = sld [smem:[%s2980_s0 + %s2647_s10]]   ;;  %s2650_s22 = smov 4  }
   0x4   :  { %s2155_s17 = sld [smem:[%s2980_s0 + %s2648_s14]]   ;;  %s2651_s26 = smov 5  }
   0x5   :  { %s2150_s21 = sld [smem:[%s2980_s0 + %s2649_s18]]   ;;  %s2652_s30 = smov 1  }
   0x6   :  { %s2151_s25 = sld [smem:[%s2980_s0 + %s2650_s22]]   ;;  %s2653_s4 = smov 9  }
   0x7   :  { %v2577_v0 = vld [vmem:[%s2149_s6] sm:$0xff]   ;;  %s2152_s29 = sld [smem:[%s2980_s0 + %s2651_s26]]   ;;  %s2654_s8 = smov 12  }
   0x8   :  { %v147_v1 = vld [vmem:[%s1_s9] sm:$0xff]  ;;  %v148_v2 = vld [vmem:[%s1_s9 + $0x8] sm:$0xff]  ;;  %v149_v3 = vld [vmem:[%s1_s9 + $0x10] sm:$0xff]  ;;  %2370 = vmatprep.subr.bf16.mxu0 %v2577_v0  ;;  %s2148_s3 = sld [smem:[%s2980_s0 + %s2652_s30]]   ;;  %s2655_s12 = smov 11  }
   0x9   :  { %v155_v4 = vpack.c.bf16 %v148_v2, %v147_v1  ;;  %v150_v5 = vld [vmem:[%s1_s9 + $0x18] sm:$0xff]  ;;  %v151_v6 = vld [vmem:[%s1_s9 + $0x20] sm:$0xff]  ;;  %v152_v7 = vld [vmem:[%s1_s9 + $0x28] sm:$0xff]  ;;  %2371 = vmatpush3.bf16.msra.mxu0 %v2577_v0  ;;  %s2156_s7 = sld [smem:[%s2980_s0 + %s2653_s4]]   ;;  %s2656_s16 = smov 7  }
   0xa   :  { %v156_v8 = vpack.c.bf16 %v150_v5, %v149_v3  ;;  %v157_v9 = vpack.c.bf16 %v152_v7, %v151_v6  ;;  %v153_v10 = vld [vmem:[%s1_s9 + $0x30] sm:$0xff]  ;;  %v154_v11 = vld [vmem:[%s1_s9 + $0x38] sm:$0xff]  ;;  %v2578_v13 = vld [vmem:[%s2153_s13 + $0x8] sm:$0xff]   ;;  %s2159_s11 = sld [smem:[%s2980_s0 + %s2654_s8]]   ;;  %s2657_s20 = smov 13  }
   0xb   :  { %2372 = vmatprep.mubr.msk.bf16.mxu0 %vm174_vm0, %v155_v4  ;;  %v158_v12 = vpack.c.bf16 %v154_v11, %v153_v10  ;;  %2380 = vmatprep.subr.bf16.mxu1 %v2578_v13  ;;  %v2579_v14 = vld [vmem:[%s2155_s17 + $0x8] sm:$0xff]   ;;  %v2580_v15 = vld [vmem:[%s2153_s13] sm:$0xff]   ;;  %s2761_s15 = sld [smem:[%s2980_s0 + %s2655_s12]]   ;;  %s2658_s24 = smov 15  }
   0xc   :  { %2373 = vmatmul.mubr.msk.bf16.vlgmr.msra.gmra.mxu0 %vm174_vm0, %v156_v8  ;;  %2381 = vmatpush3.bf16.msra.mxu1 %v2578_v13  ;;  %v2581_v16 = vld [vmem:[%s2155_s17] sm:$0xff]   ;;  %s2154_s19 = sld [smem:[%s2980_s0 + %s2656_s16]]   ;;  %s2659_s28 = smov 10  }
   0xd   :  { %2376 = vmatprep.mubr.msk.bf16.mxu0 %vm174_vm0, %v157_v9  ;;  %2392 = vmatprep.subr.bf16.mxu0 %v2579_v14  ;;  %v2181_v19 = vld [vmem:[%s2150_s21] ss:$0 sm:$0xff]  ;;  %s2160_s23 = sld [smem:[%s2980_s0 + %s2657_s20]]   ;;  %s2660_s2 = smov 14  }
   0xe   :  { %2393 = vmatpush3.bf16.msra.mxu0 %v2579_v14  ;;  %2382 = vmatprep.subr.bf16.mxu1 %v2580_v15  ;;  %s2794_s27 = sld [smem:[%s2980_s0 + %s2658_s24]]   ;;  %s2661_s6 = smov 19  }
   0xf   :  { %2394 = vmatprep.subr.bf16.mxu0 %v2581_v16  ;;  %s2157_s1 = sld [smem:[%s2980_s0 + %s2659_s28]]   ;;  %s2662_s10 = smov 16  }
  0x10   :  { %2383 = vmatpush3.bf16.msra.mxu1 %v2580_v15  ;;  %s2161_s5 = sld [smem:[%s2980_s0 + %s2660_s2]]   ;;  %s2663_s14 = smov 17  }
  0x11   :  { %s2166_s9 = sld [smem:[%s2980_s0 + %s2661_s6]]   ;;  %s2664_s18 = smov 18  }
  0x12   :  { %2395 = vmatpush3.bf16.msra.mxu0 %v2581_v16  ;;  %s2163_s13 = sld [smem:[%s2980_s0 + %s2662_s10]]   ;;  %s2665_s22 = smov 23  }
  0x13   :  { %s2164_s17 = sld [smem:[%s2980_s0 + %s2663_s14]]   ;;  %s2666_s26 = smov 20  }
  0x14   :  { %2377 = vmatmul.mubr.msk.bf16.gmra.mxu0 %vm174_vm0, %v158_v12  ;;  %s2165_s21 = sld [smem:[%s2980_s0 + %s2664_s18]]   ;;  %s2667_s30 = smov 21  }
  0x15   :  { %s2668_s4 = smov 22   ;;  %s2669_s8 = smov 27  }
  0x16   :  { %s2670_s12 = smov 24   ;;  %s2671_s16 = smov 25  }
  0x17   :  { %s2672_s20 = smov 26   ;;  %s2673_s24 = smov 31  }
  0x18   :  { %s2674_s28 = smov 28   ;;  %s2675_s2 = smov 29  }
  0x19   :  { %s2676_s6 = smov 30   ;;  %s2677_s10 = smov 32  }
  0x1a   :  { %s2678_s14 = smov 33  }
  0xcc   :  { %v2374_v17 = vpop.f32.mrf.mxu0 }
  0xcd   :  { %v230_v23 = vadd.f32 %v2374_v17, %v2181_v19 }
  0xce   :  { %v221_v18 = vpop.f32.mrf.mxu0 }
  0xcf   :  { %v222_v21 = vadd.f32 %v2181_v19, %v221_v18  ;;  %v256_v31 = vsel %vm252_vm1, %v230_v23, 0.0 }
  0xd0   :  { %v2375_v20 = vpop.f32.mrf.mxu0 }
  0xd1   :  { %v253_v26 = vsel %vm252_vm1, %v222_v21, 0.0  ;;  %v233_v27 = vadd.f32 %v2375_v20, %v2181_v19 }
  0xd2   :  { %v224_v22 = vpop.f32.mrf.mxu0 }
  0xd3   :  { %v225_v24 = vadd.f32 %v2181_v19, %v224_v22  ;;  %v258_v35 = vsel %vm252_vm1, %v233_v27, 0.0 }
  0xd4   :  { %v2378_v25 = vpop.f32.mrf.mxu0 }
  0xd5   :  { %v254_v28 = vsel %vm252_vm1, %v225_v24, 0.0  ;;  %v246_v38 = vadd.f32 %v2378_v25, %v2181_v19 }
  0xd6   :  { %v255_v29 = vadd.f32 %v254_v28, %v253_v26  ;;  %v237_v30 = vpop.f32.mrf.mxu0 }
  0xd7   :  { %v238_v32 = vadd.f32 %v2181_v19, %v237_v30  ;;  %v264_v45 = vsel %vm252_vm1, %v246_v38, 0.0 }
  0xd8   :  { %v257_v33 = vadd.f32 %v256_v31, %v255_v29  ;;  %v2379_v34 = vpop.f32.mrf.mxu0 }
  0xd9   :  { %v260_v39 = vsel %vm252_vm1, %v238_v32, 0.0  ;;  %v249_v42 = vadd.f32 %v2379_v34, %v2181_v19 }
  0xda   :  { %v259_v36 = vadd.f32 %v258_v35, %v257_v33  ;;  %v240_v37 = vpop.f32.mrf.mxu0 }
  0xdb   :  { %v241_v40 = vadd.f32 %v2181_v19, %v240_v37  ;;  %v266_v47 = vsel %vm252_vm1, %v249_v42, 0.0  ;;  %v2188_v37 = vld [vmem:[%s2152_s29] ss:$0 sm:$0xff]  ;;  %s2167_s29 = sld [smem:[%s2980_s0 + %s2666_s26]]  }
  0xdc   :  { %v261_v41 = vadd.f32 %v260_v39, %v259_v36 }
  0xdd   :  { %v262_v43 = vsel %vm252_vm1, %v241_v40, 0.0 }
  0xde   :  { %v263_v44 = vadd.f32 %v262_v43, %v261_v41 }
  0xe0   :  { %v265_v46 = vadd.f32 %v264_v45, %v263_v44 }
  0xe2   :  { %v267_v48 = vadd.f32 %v266_v47, %v265_v46 }
  0xe4   :  { %v268_v49 = vrot.slane %v267_v48, 4 }
  0xe6   :  { %v269_v50 = vadd.f32 %v268_v49, %v267_v48 }
  0xe8   :  { %v270_v51 = vrot.slane %v269_v50, 2 }
  0xea   :  { %v271_v52 = vadd.f32 %v270_v51, %v269_v50 }
  0xec   :  { %v272_v53 = vrot.slane %v271_v52, 1 }
  0xee   :  { %v273_v54 = vadd.f32 %v272_v53, %v271_v52 }
  0xf0   :  { %v275_v55 = vmul.f32 0.015625, %v273_v54 }
  0xf2   :  { %v276_v56 = vsub.f32 %v222_v21, %v275_v55  ;;  %v277_v57 = vsub.f32 %v225_v24, %v275_v55  ;;  %v278_v58 = vsub.f32 %v230_v23, %v275_v55  ;;  %v279_v59 = vsub.f32 %v233_v27, %v275_v55 }
  0xf3   :  { %v280_v60 = vsub.f32 %v238_v32, %v275_v55  ;;  %v281_v0 = vsub.f32 %v241_v40, %v275_v55  ;;  %v282_v5 = vsub.f32 %v246_v38, %v275_v55  ;;  %v283_v9 = vsub.f32 %v249_v42, %v275_v55  ;;  %v2187_v32 = vld [vmem:[%s2151_s25] ss:$0 sm:$0xff]  ;;  %s2170_s25 = sld [smem:[%s2980_s0 + %s2665_s22]]  }
  0xf4   :  { %v284_v61 = vmul.f32 %v276_v56, %v276_v56  ;;  %v285_v62 = vmul.f32 %v277_v57, %v277_v57  ;;  %v286_v63 = vmul.f32 %v278_v58, %v278_v58  ;;  %v287_v1 = vmul.f32 %v279_v59, %v279_v59 }
  0xf5   :  { %v288_v6 = vmul.f32 %v280_v60, %v280_v60  ;;  %v289_v10 = vmul.f32 %v281_v0, %v281_v0  ;;  %v290_v13 = vmul.f32 %v282_v5, %v282_v5  ;;  %v291_v16 = vmul.f32 %v283_v9, %v283_v9 }
  0xf6   :  { %v292_v2 = vsel %vm252_vm1, %v284_v61, 0.0  ;;  %v293_v3 = vsel %vm252_vm1, %v285_v62, 0.0  ;;  %v295_v7 = vsel %vm252_vm1, %v286_v63, 0.0  ;;  %v297_v11 = vsel %vm252_vm1, %v287_v1, 0.0  ;;  %v2736_v62 = vld [vmem:[%s2148_s3] sm:$0xff]  }
  0xf7   :  { %v294_v4 = vadd.f32 %v293_v3, %v292_v2  ;;  %v299_v14 = vsel %vm252_vm1, %v288_v6, 0.0  ;;  %v301_v17 = vsel %vm252_vm1, %v289_v10, 0.0  ;;  %v303_v19 = vsel %vm252_vm1, %v290_v13, 0.0  ;;  %v2748_v13 = vld [vmem:[%s2148_s3 + $0x18] sm:$0xff]  }
  0xf8   :  { %v305_v21 = vsel %vm252_vm1, %v291_v16, 0.0  ;;  %v2588_v16 = vld [vmem:[%s2156_s7] sm:$0xff]  }
  0xf9   :  { %v296_v8 = vadd.f32 %v295_v7, %v294_v4 }
  0xfb   :  { %v298_v12 = vadd.f32 %v297_v11, %v296_v8  ;;  %v2740_v11 = vld [vmem:[%s2148_s3 + $0x8] sm:$0xff]  }
  0xfd   :  { %v300_v15 = vadd.f32 %v299_v14, %v298_v12  ;;  %v2742_v12 = vld [vmem:[%s2148_s3 + $0x10] sm:$0xff]   ;;  %v2586_v14 = vld [vmem:[%s2156_s7 + $0x8] sm:$0xff]   ;;  %s2168_s3 = sld [smem:[%s2980_s0 + %s2667_s30]]  }
  0xfe   :  { %s2169_s7 = sld [smem:[%s2980_s0 + %s2668_s4]]  }
  0xff   :  { %v302_v18 = vadd.f32 %v301_v17, %v300_v15  ;;  %v2587_v15 = vld [vmem:[%s2159_s11 + $0x8] sm:$0xff]   ;;  %v2589_v17 = vld [vmem:[%s2159_s11] sm:$0xff]   ;;  %s2174_s11 = sld [smem:[%s2980_s0 + %s2669_s8]]  }
 0x100   :  { %2420 = vmatprep.subr.bf16.mxu0 %v2587_v15 }
 0x101   :  { %v304_v20 = vadd.f32 %v303_v19, %v302_v18  ;;  %v2590_v18 = vld [vmem:[%s2761_s15 + $0x8] sm:$0xff]  }
 0x103   :  { %v306_v22 = vadd.f32 %v305_v21, %v304_v20 }
 0x105   :  { %v307_v23 = vrot.slane %v306_v22, 4 }
 0x107   :  { %v308_v24 = vadd.f32 %v307_v23, %v306_v22 }
 0x109   :  { %v309_v25 = vrot.slane %v308_v24, 2 }
 0x10b   :  { %v310_v26 = vadd.f32 %v309_v25, %v308_v24  ;;  %v2201_v24 = vld [vmem:[%s2154_s19] ss:$0 sm:$0xff]  ;;  %s2172_s19 = sld [smem:[%s2980_s0 + %s2671_s16]]  }
 0x10d   :  { %v311_v27 = vrot.slane %v310_v26, 1 }
 0x10f   :  { %v312_v28 = vadd.f32 %v311_v27, %v310_v26 }
 0x111   :  { %v313_v29 = vmul.f32 0.015625, %v312_v28 }
 0x113   :  { %v314_v30 = vadd.f32 1e-05, %v313_v29 }
 0x115   :  { %2604 = vrsqrt.f32 %v314_v30 }
 0x122   :  { %v2605_v31 = vpop.eup %2604 }
 0x123   :  { %v321_v33 = vmul.f32 %v2605_v31, %v281_v0  ;;  %v316_v34 = vmul.f32 %v2605_v31, %v276_v56  ;;  %v317_v35 = vmul.f32 %v2605_v31, %v277_v57  ;;  %v318_v36 = vmul.f32 %v2605_v31, %v278_v58 }
 0x124   :  { %v319_v38 = vmul.f32 %v2605_v31, %v279_v59  ;;  %v320_v39 = vmul.f32 %v2605_v31, %v280_v60  ;;  %v322_v46 = vmul.f32 %v2605_v31, %v282_v5  ;;  %v323_v47 = vmul.f32 %v2605_v31, %v283_v9 }
 0x125   :  { %v336_v40 = vmul.f32 %v2187_v32, %v321_v33  ;;  %v331_v41 = vmul.f32 %v2187_v32, %v316_v34  ;;  %v332_v42 = vmul.f32 %v2187_v32, %v317_v35  ;;  %v333_v43 = vmul.f32 %v2187_v32, %v318_v36 }
 0x126   :  { %v334_v44 = vmul.f32 %v2187_v32, %v319_v38  ;;  %v335_v45 = vmul.f32 %v2187_v32, %v320_v39  ;;  %v337_v56 = vmul.f32 %v2187_v32, %v322_v46  ;;  %v338_v57 = vmul.f32 %v2187_v32, %v323_v47 }
 0x127   :  { %v351_v48 = vadd.f32 %v2188_v37, %v336_v40  ;;  %v346_v49 = vadd.f32 %v2188_v37, %v331_v41  ;;  %v347_v50 = vadd.f32 %v2188_v37, %v332_v42  ;;  %v348_v51 = vadd.f32 %v2188_v37, %v333_v43 }
 0x128   :  { %v349_v52 = vadd.f32 %v2188_v37, %v334_v44  ;;  %v350_v53 = vadd.f32 %v2188_v37, %v335_v45  ;;  %v352_v59 = vadd.f32 %v2188_v37, %v337_v56  ;;  %v353_v60 = vadd.f32 %v2188_v37, %v338_v57 }
 0x129   :  { %v355_v54 = vpack.c.bf16 %v347_v50, %v346_v49 }
 0x12a   :  { %v356_v55 = vpack.c.bf16 %v349_v52, %v348_v51  ;;  %v357_v58 = vpack.c.bf16 %v351_v48, %v350_v53  ;;  %v358_v61 = vpack.c.bf16 %v353_v60, %v352_v59  ;;  %v2591_v52 = vld [vmem:[%s2761_s15] sm:$0xff]   ;;  %s2171_s15 = sld [smem:[%s2980_s0 + %s2670_s12]]  }
 0x12b   :  { %2384 = vmatprep.mubr.msk.bf16.mxu1 %vm252_vm1, %v355_v54  ;;  %2396 = vmatprep.mubr.msk.bf16.mxu0 %vm252_vm1, %v355_v54 }
 0x12c   :  { %2385 = vmatmul.mubr.msk.bf16.vlgmr.msra.gmra.mxu1 %vm252_vm1, %v356_v55  ;;  %2397 = vmatmul.mubr.msk.bf16.vlgmr.msra.gmra.mxu0 %vm252_vm1, %v356_v55 }
 0x12d   :  { %2388 = vmatprep.mubr.msk.bf16.mxu1 %vm252_vm1, %v357_v58  ;;  %2400 = vmatprep.mubr.msk.bf16.mxu0 %vm252_vm1, %v357_v58 }
 0x12e   :  { %2421 = vmatpush3.bf16.msra.mxu0 %v2587_v15 }
 0x12f   :  { %2422 = vmatprep.subr.bf16.mxu0 %v2589_v17 }
 0x132   :  { %2423 = vmatpush3.bf16.msra.mxu0 %v2589_v17  ;;  %v2593_v17 = vld [vmem:[%s2160_s23] sm:$0xff]  }
 0x133   :  { %2444 = vmatprep.subr.bf16.mxu0 %v2590_v18 }
 0x134   :  { %2389 = vmatmul.mubr.msk.bf16.gmra.mxu1 %vm252_vm1, %v358_v61  ;;  %2401 = vmatmul.mubr.msk.bf16.gmra.mxu0 %vm252_vm1, %v358_v61 }
 0x135   :  { %2412 = vmatprep.mubr.msk.bf16.mxu1 %vm564_vm2, %v2736_v62 }
 0x1ec   :  { %v2386_v63 = vpop.f32.mrf.mxu1  ;;  %v2398_v19 = vpop.f32.mrf.mxu0 }
 0x1ee   :  { %v421_v0 = vpop.f32.mrf.mxu1  ;;  %v502_v20 = vpop.f32.mrf.mxu0 }
 0x1f0   :  { %v2387_v1 = vpop.f32.mrf.mxu1  ;;  %v2399_v21 = vpop.f32.mrf.mxu0 }
 0x1f1   :  { %v534_v9 = vpack.c.bf16 %v2387_v1, %v2386_v63 }
 0x1f2   :  { %v424_v2 = vpop.f32.mrf.mxu1  ;;  %v505_v22 = vpop.f32.mrf.mxu0 }
 0x1f3   :  { %v533_v10 = vpack.c.bf16 %v424_v2, %v421_v0 }
 0x1f4   :  { %v2390_v3 = vpop.f32.mrf.mxu1  ;;  %v2402_v27 = vpop.f32.mrf.mxu0 }
 0x1f6   :  { %v437_v4 = vpop.f32.mrf.mxu1  ;;  %v518_v35 = vpop.f32.mrf.mxu0 }
 0x1f8   :  { %v2391_v5 = vpop.f32.mrf.mxu1  ;;  %v2403_v44 = vpop.f32.mrf.mxu0 }
 0x1f9   :  { %v536_v6 = vpack.c.bf16 %v2391_v5, %v2390_v3 }
 0x1fa   :  { %v440_v7 = vpop.f32.mrf.mxu1  ;;  %v521_v56 = vpop.f32.mrf.mxu0 }
 0x1fb   :  { %v535_v8 = vpack.c.bf16 %v440_v7, %v437_v4  ;;  %2404 = vmatprep.subr.bf16.mxu1 %v536_v6 }
 0x1fc   :  { %2405 = vmatpush3.bf16.msra.mxu1 %v536_v6 }
 0x1fd   :  { %2406 = vmatprep.subr.bf16.mxu1 %v535_v8 }
 0x200   :  { %2407 = vmatpush3.bf16.msra.mxu1 %v535_v8 }
 0x201   :  { %2408 = vmatprep.subr.bf16.mxu1 %v534_v9 }
 0x204   :  { %2409 = vmatpush3.bf16.msra.mxu1 %v534_v9 }
 0x205   :  { %2410 = vmatprep.subr.bf16.mxu1 %v533_v10 }
 0x208   :  { %2411 = vmatpush3.bf16.msra.mxu1 %v533_v10 }
 0x209   :  { %2432 = vmatprep.subr.bf16.mxu1 %v2586_v14 }
 0x20b   :  { %2413 = vmatmul.mubr.msk.bf16.vlgmr.msra.gmra.mxu1 %vm564_vm2, %v2740_v11 }
 0x20c   :  { %2416 = vmatprep.mubr.msk.bf16.mxu1 %vm564_vm2, %v2742_v12  ;;  %2433 = vmatpush3.bf16.msra.mxu1 %v2586_v14 }
 0x20d   :  { %2434 = vmatprep.subr.bf16.mxu1 %v2588_v16 }
 0x210   :  { %2435 = vmatpush3.bf16.msra.mxu1 %v2588_v16  ;;  %v2592_v16 = vld [vmem:[%s2160_s23 + $0x8] sm:$0xff]   ;;  %s2173_s23 = sld [smem:[%s2980_s0 + %s2672_s20]]  }
 0x213   :  { %2417 = vmatmul.mubr.msk.bf16.gmra.mxu1 %vm564_vm2, %v2748_v13 }
 0x2cb   :  { %v2414_v23 = vpop.f32.mrf.mxu1 }
 0x2cc   :  { %v620_v28 = vadd.f32 %v2414_v23, %v2201_v24 }
 0x2cd   :  { %v611_v25 = vpop.f32.mrf.mxu1 }
 0x2ce   :  { %v612_v26 = vadd.f32 %v2201_v24, %v611_v25  ;;  %v644_v36 = vadd.f32 %v2398_v19, %v620_v28 }
 0x2cf   :  { %v2415_v29 = vpop.f32.mrf.mxu1 }
 0x2d0   :  { %v623_v30 = vadd.f32 %v2415_v29, %v2201_v24  ;;  %v642_v32 = vadd.f32 %v612_v26, %v502_v20  ;;  %v652_v45 = vmax.f32 %v644_v36, 0.0  ;;  %v2229_v29 = vld [vmem:[%s2157_s1] ss:$0 sm:$0xff]  ;;  %s2175_s1 = sld [smem:[%s2980_s0 + %s2674_s28]]  }
 0x2d1   :  { %v614_v31 = vpop.f32.mrf.mxu1 }
 0x2d2   :  { %v645_v33 = vadd.f32 %v2399_v21, %v623_v30  ;;  %v615_v34 = vadd.f32 %v2201_v24, %v614_v31  ;;  %v650_v41 = vmax.f32 %v642_v32, 0.0 }
 0x2d3   :  { %v2418_v37 = vpop.f32.mrf.mxu1 }
 0x2d4   :  { %v643_v38 = vadd.f32 %v615_v34, %v505_v22  ;;  %v653_v39 = vmax.f32 %v645_v33, 0.0  ;;  %v636_v46 = vadd.f32 %v2418_v37, %v2201_v24 }
 0x2d5   :  { %v627_v40 = vpop.f32.mrf.mxu1 }
 0x2d6   :  { %v651_v42 = vmax.f32 %v643_v38, 0.0  ;;  %v628_v43 = vadd.f32 %v2201_v24, %v627_v40  ;;  %v659_v50 = vpack.c.bf16 %v653_v39, %v652_v45  ;;  %v648_v57 = vadd.f32 %v2402_v27, %v636_v46 }
 0x2d7   :  { %v2419_v47 = vpop.f32.mrf.mxu1 }
 0x2d8   :  { %v658_v48 = vpack.c.bf16 %v651_v42, %v650_v41  ;;  %v639_v49 = vadd.f32 %v2419_v47, %v2201_v24  ;;  %v646_v53 = vadd.f32 %v628_v43, %v518_v35  ;;  %v656_v63 = vmax.f32 %v648_v57, 0.0 }
 0x2d9   :  { %v630_v51 = vpop.f32.mrf.mxu1 }
 0x2da   :  { %v649_v54 = vadd.f32 %v2403_v44, %v639_v49  ;;  %v631_v55 = vadd.f32 %v2201_v24, %v630_v51  ;;  %2424 = vmatprep.mubr.msk.bf16.mxu0 %vm252_vm1, %v658_v48  ;;  %2436 = vmatprep.mubr.msk.bf16.mxu1 %vm252_vm1, %v658_v48  ;;  %v654_v60 = vmax.f32 %v646_v53, 0.0 }
 0x2db   :  { %2425 = vmatmul.mubr.msk.bf16.vlgmr.msra.gmra.mxu0 %vm252_vm1, %v659_v50  ;;  %2437 = vmatmul.mubr.msk.bf16.vlgmr.msra.gmra.mxu1 %vm252_vm1, %v659_v50 }
 0x2dc   :  { %v647_v58 = vadd.f32 %v631_v55, %v521_v56  ;;  %2445 = vmatpush3.bf16.msra.mxu0 %v2590_v18  ;;  %v657_v59 = vmax.f32 %v649_v54, 0.0 }
 0x2dd   :  { %2446 = vmatprep.subr.bf16.mxu0 %v2591_v52 }
 0x2de   :  { %v655_v61 = vmax.f32 %v647_v58, 0.0  ;;  %v661_v1 = vpack.c.bf16 %v657_v59, %v656_v63 }
 0x2e0   :  { %v660_v0 = vpack.c.bf16 %v655_v61, %v654_v60  ;;  %2447 = vmatpush3.bf16.msra.mxu0 %v2591_v52 }
 0x2e1   :  { %2472 = vmatprep.subr.bf16.mxu0 %v2592_v16 }
 0x2e2   :  { %2428 = vmatprep.mubr.msk.bf16.mxu0 %vm252_vm1, %v660_v0  ;;  %2440 = vmatprep.mubr.msk.bf16.mxu1 %vm252_vm1, %v660_v0 }
 0x2e3   :  { %2429 = vmatmul.mubr.msk.bf16.gmra.mxu0 %vm252_vm1, %v661_v1  ;;  %2441 = vmatmul.mubr.msk.bf16.gmra.mxu1 %vm252_vm1, %v661_v1 }
 0x2e4   :  { %2448 = vmatprep.mubr.msk.bf16.mxu0 %vm252_vm1, %v658_v48  ;;  %2464 = vmatprep.mubr.msk.bf16.mxu1 %vm564_vm2, %v2736_v62 }
 0x2eb   :  { %2449 = vmatmul.mubr.msk.bf16.vlgmr.msra.gmra.mxu0 %vm252_vm1, %v659_v50 }
 0x2ec   :  { %2452 = vmatprep.mubr.msk.bf16.mxu0 %vm252_vm1, %v660_v0  ;;  %2473 = vmatpush3.bf16.msra.mxu0 %v2592_v16 }
 0x2ed   :  { %2474 = vmatprep.subr.bf16.mxu0 %v2593_v17 }
 0x2f0   :  { %2475 = vmatpush3.bf16.msra.mxu0 %v2593_v17 }
 0x2f3   :  { %2453 = vmatmul.mubr.msk.bf16.gmra.mxu0 %vm252_vm1, %v661_v1 }
 0x39b   :  { %v2438_v2 = vpop.f32.mrf.mxu1 }
 0x39d   :  { %v819_v3 = vpop.f32.mrf.mxu1 }
 0x39f   :  { %v2439_v4 = vpop.f32.mrf.mxu1 }
 0x3a0   :  { %v932_v62 = vpack.c.bf16 %v2439_v4, %v2438_v2 }
 0x3a1   :  { %v822_v5 = vpop.f32.mrf.mxu1 }
 0x3a2   :  { %v931_v15 = vpack.c.bf16 %v822_v5, %v819_v3 }
 0x3a3   :  { %v2442_v6 = vpop.f32.mrf.mxu1 }
 0x3a5   :  { %v835_v7 = vpop.f32.mrf.mxu1 }
 0x3a7   :  { %v2443_v8 = vpop.f32.mrf.mxu1 }
 0x3a8   :  { %v934_v9 = vpack.c.bf16 %v2443_v8, %v2442_v6  ;;  %v2595_v6 = vld [vmem:[%s2794_s27] sm:$0xff]  }
 0x3a9   :  { %v838_v10 = vpop.f32.mrf.mxu1 }
 0x3aa   :  { %v933_v14 = vpack.c.bf16 %v838_v10, %v835_v7  ;;  %2456 = vmatprep.subr.bf16.mxu1 %v934_v9  ;;  %v2216_v7 = vld [vmem:[%s2161_s5] ss:$0 sm:$0xff]  ;;  %s2176_s5 = sld [smem:[%s2980_s0 + %s2675_s2]]  }
 0x3ab   :  { %2457 = vmatpush3.bf16.msra.mxu1 %v934_v9 }
 0x3ac   :  { %2458 = vmatprep.subr.bf16.mxu1 %v933_v14 }
 0x3af   :  { %2459 = vmatpush3.bf16.msra.mxu1 %v933_v14 }
 0x3b0   :  { %2460 = vmatprep.subr.bf16.mxu1 %v932_v62 }
 0x3b3   :  { %2461 = vmatpush3.bf16.msra.mxu1 %v932_v62 }
 0x3b4   :  { %2462 = vmatprep.subr.bf16.mxu1 %v931_v15 }
 0x3b7   :  { %2463 = vmatpush3.bf16.msra.mxu1 %v931_v15 }
 0x3ba   :  { %2465 = vmatmul.mubr.msk.bf16.vlgmr.msra.gmra.mxu1 %vm564_vm2, %v2740_v11  ;;  %v2594_v11 = vld [vmem:[%s2794_s27 + $0x8] sm:$0xff]   ;;  %s2178_s27 = sld [smem:[%s2980_s0 + %s2673_s24]]  }
 0x3bb   :  { %2468 = vmatprep.mubr.msk.bf16.mxu1 %vm564_vm2, %v2742_v12  ;;  %2484 = vmatprep.subr.bf16.mxu1 %v2594_v11  ;;  %v2797_v12 = vpop.f32.mrf.mxu0 }
 0x3bc   :  { %2485 = vmatpush3.bf16.msra.mxu1 %v2594_v11  ;;  %v763_v10 = vadd.f32 %v2797_v12, %v2216_v7 }
 0x3bd   :  { %2486 = vmatprep.subr.bf16.mxu1 %v2595_v6 }
 0x3c0   :  { %2487 = vmatpush3.bf16.msra.mxu1 %v2595_v6 }
 0x3c2   :  { %2469 = vmatmul.mubr.msk.bf16.gmra.mxu1 %vm564_vm2, %v2748_v13  ;;  %v2799_v13 = vpop.f32.mrf.mxu0 }
 0x3c3   :  { %v761_v15 = vadd.f32 %v2216_v7, %v2799_v13 }
 0x3c4   :  { %v2801_v18 = vpop.f32.mrf.mxu0 }
 0x3c5   :  { %v764_v14 = vadd.f32 %v2801_v18, %v2216_v7 }
 0x3c6   :  { %v2803_v19 = vpop.f32.mrf.mxu0 }
 0x3c7   :  { %v762_v16 = vadd.f32 %v2216_v7, %v2803_v19 }
 0x3c8   :  { %v2805_v20 = vpop.f32.mrf.mxu0 }
 0x3ca   :  { %v2807_v21 = vpop.f32.mrf.mxu0 }
 0x3cb   :  { %v765_v13 = vadd.f32 %v2216_v7, %v2807_v21  ;;  %v2597_v21 = vld [vmem:[%s2166_s9] sm:$0xff]  }
 0x3cc   :  { %v2809_v22 = vpop.f32.mrf.mxu0 }
 0x3cd   :  { %v768_v12 = vadd.f32 %v2809_v22, %v2216_v7 }
 0x3ce   :  { %v2811_v23 = vpop.f32.mrf.mxu0 }
 0x3cf   :  { %v766_v19 = vadd.f32 %v2216_v7, %v2811_v23 }
 0x3d0   :  { %v2450_v24 = vpop.f32.mrf.mxu0 }
 0x3d2   :  { %v900_v25 = vpop.f32.mrf.mxu0 }
 0x3d4   :  { %v2451_v26 = vpop.f32.mrf.mxu0 }
 0x3d6   :  { %v903_v27 = vpop.f32.mrf.mxu0 }
 0x3d8   :  { %v2454_v32 = vpop.f32.mrf.mxu0 }
 0x3da   :  { %v916_v40 = vpop.f32.mrf.mxu0 }
 0x3dc   :  { %v2455_v49 = vpop.f32.mrf.mxu0 }
 0x3de   :  { %v919_v60 = vpop.f32.mrf.mxu0 }
 0x47a   :  { %v2466_v28 = vpop.f32.mrf.mxu1 }
 0x47b   :  { %v985_v33 = vadd.f32 %v2466_v28, %v2229_v29 }
 0x47c   :  { %v976_v30 = vpop.f32.mrf.mxu1 }
 0x47d   :  { %v977_v31 = vadd.f32 %v2229_v29, %v976_v30  ;;  %v1009_v41 = vadd.f32 %v2450_v24, %v985_v33 }
 0x47e   :  { %v2467_v34 = vpop.f32.mrf.mxu1 }
 0x47f   :  { %v988_v35 = vadd.f32 %v2467_v34, %v2229_v29  ;;  %v1007_v37 = vadd.f32 %v977_v31, %v900_v25  ;;  %v1017_v50 = vmax.f32 %v1009_v41, 0.0  ;;  %v767_v31 = vadd.f32 %v2805_v20, %v2216_v7  ;;  %v2596_v20 = vld [vmem:[%s2166_s9 + $0x8] sm:$0xff]   ;;  %s2177_s9 = sld [smem:[%s2980_s0 + %s2676_s6]]  }
 0x480   :  { %v979_v36 = vpop.f32.mrf.mxu1  ;;  %2496 = vmatprep.subr.bf16.mxu0 %v2596_v20 }
 0x481   :  { %v1010_v38 = vadd.f32 %v2451_v26, %v988_v35  ;;  %v980_v39 = vadd.f32 %v2229_v29, %v979_v36  ;;  %v1015_v46 = vmax.f32 %v1007_v37, 0.0 }
 0x482   :  { %v2470_v42 = vpop.f32.mrf.mxu1 }
 0x483   :  { %v1008_v43 = vadd.f32 %v980_v39, %v903_v27  ;;  %v1018_v44 = vmax.f32 %v1010_v38, 0.0  ;;  %v1001_v51 = vadd.f32 %v2470_v42, %v2229_v29  ;;  %v2240_v39 = vld [vmem:[%s2163_s13] ss:$0 sm:$0xff]  ;;  %s2179_s13 = sld [smem:[%s2980_s0 + %s2677_s10]]  }
 0x484   :  { %v992_v45 = vpop.f32.mrf.mxu1 }
 0x485   :  { %v1016_v47 = vmax.f32 %v1008_v43, 0.0  ;;  %v993_v48 = vadd.f32 %v2229_v29, %v992_v45  ;;  %v1024_v55 = vpack.c.bf16 %v1018_v44, %v1017_v50  ;;  %v1013_v61 = vadd.f32 %v2454_v32, %v1001_v51 }
 0x486   :  { %v2471_v52 = vpop.f32.mrf.mxu1 }
 0x487   :  { %v1023_v53 = vpack.c.bf16 %v1016_v47, %v1015_v46  ;;  %v1004_v54 = vadd.f32 %v2471_v52, %v2229_v29  ;;  %v1011_v57 = vadd.f32 %v993_v48, %v916_v40  ;;  %v1021_v3 = vmax.f32 %v1013_v61, 0.0 }
 0x488   :  { %v995_v56 = vpop.f32.mrf.mxu1 }
 0x489   :  { %v1014_v58 = vadd.f32 %v2455_v49, %v1004_v54  ;;  %v996_v59 = vadd.f32 %v2229_v29, %v995_v56  ;;  %2476 = vmatprep.mubr.msk.bf16.mxu0 %vm252_vm1, %v1023_v53  ;;  %v1019_v1 = vmax.f32 %v1011_v57, 0.0 }
 0x48a   :  { %2477 = vmatmul.mubr.msk.bf16.vlgmr.msra.gmra.mxu0 %vm252_vm1, %v1024_v55 }
 0x48b   :  { %v1012_v63 = vadd.f32 %v996_v59, %v919_v60  ;;  %v1022_v0 = vmax.f32 %v1014_v58, 0.0  ;;  %2497 = vmatpush3.bf16.msra.mxu0 %v2596_v20 }
 0x48c   :  { %2498 = vmatprep.subr.bf16.mxu0 %v2597_v21 }
 0x48d   :  { %v1020_v2 = vmax.f32 %v1012_v63, 0.0  ;;  %v1026_v5 = vpack.c.bf16 %v1022_v0, %v1021_v3 }
 0x48f   :  { %v1025_v4 = vpack.c.bf16 %v1020_v2, %v1019_v1  ;;  %2499 = vmatpush3.bf16.msra.mxu0 %v2597_v21 }
 0x491   :  { %2480 = vmatprep.mubr.msk.bf16.mxu0 %vm252_vm1, %v1025_v4 }
 0x492   :  { %2481 = vmatmul.mubr.msk.bf16.gmra.mxu0 %vm252_vm1, %v1026_v5 }
 0x54a   :  { %v2478_v8 = vpop.f32.mrf.mxu0 }
 0x54b   :  { %v1122_v17 = vadd.f32 %v2478_v8, %v763_v10 }
 0x54c   :  { %v1089_v9 = vpop.f32.mrf.mxu0 }
 0x54d   :  { %v1120_v25 = vadd.f32 %v1089_v9, %v761_v15 }
 0x54e   :  { %v2479_v62 = vpop.f32.mrf.mxu0 }
 0x54f   :  { %v1123_v11 = vadd.f32 %v2479_v62, %v764_v14 }
 0x550   :  { %v1092_v24 = vpop.f32.mrf.mxu0 }
 0x551   :  { %v1129_v26 = vpack.c.bf16 %v1123_v11, %v1122_v17  ;;  %v1121_v27 = vadd.f32 %v1092_v24, %v762_v16 }
 0x552   :  { %v2482_v28 = vpop.f32.mrf.mxu0 }
 0x553   :  { %v1128_v29 = vpack.c.bf16 %v1121_v27, %v1120_v25  ;;  %v1126_v32 = vadd.f32 %v2482_v28, %v767_v31 }
 0x554   :  { %v1105_v30 = vpop.f32.mrf.mxu0 }
 0x555   :  { %2488 = vmatprep.mubr.msk.bf16.mxu1 %vm252_vm1, %v1128_v29  ;;  %v1124_v35 = vadd.f32 %v1105_v30, %v765_v13 }
 0x556   :  { %v2483_v18 = vpop.f32.mrf.mxu0  ;;  %2489 = vmatmul.mubr.msk.bf16.vlgmr.msra.gmra.mxu1 %vm252_vm1, %v1129_v26 }
 0x557   :  { %v1127_v33 = vadd.f32 %v2483_v18, %v768_v12 }
 0x558   :  { %v1108_v34 = vpop.f32.mrf.mxu0 }
 0x559   :  { %v1131_v36 = vpack.c.bf16 %v1127_v33, %v1126_v32  ;;  %v1125_v37 = vadd.f32 %v1108_v34, %v766_v19 }
 0x55b   :  { %v1130_v38 = vpack.c.bf16 %v1125_v37, %v1124_v35 }
 0x55d   :  { %2492 = vmatprep.mubr.msk.bf16.mxu1 %vm252_vm1, %v1130_v38 }
 0x55e   :  { %2493 = vmatmul.mubr.msk.bf16.gmra.mxu1 %vm252_vm1, %v1131_v36 }
 0x616   :  { %v2490_v22 = vpop.f32.mrf.mxu1 }
 0x617   :  { %v1210_v43 = vadd.f32 %v2490_v22, %v2240_v39 }
 0x618   :  { %v1201_v23 = vpop.f32.mrf.mxu1 }
 0x619   :  { %v1202_v41 = vadd.f32 %v2240_v39, %v1201_v23  ;;  %v1235_v51 = vsel %vm252_vm1, %v1210_v43, 0.0 }
 0x61a   :  { %v2491_v40 = vpop.f32.mrf.mxu1 }
 0x61b   :  { %v1232_v46 = vsel %vm252_vm1, %v1202_v41, 0.0  ;;  %v1213_v47 = vadd.f32 %v2491_v40, %v2240_v39 }
 0x61c   :  { %v1204_v42 = vpop.f32.mrf.mxu1 }
 0x61d   :  { %v1205_v44 = vadd.f32 %v2240_v39, %v1204_v42  ;;  %v1237_v55 = vsel %vm252_vm1, %v1213_v47, 0.0 }
 0x61e   :  { %v2494_v45 = vpop.f32.mrf.mxu1 }
 0x61f   :  { %v1233_v48 = vsel %vm252_vm1, %v1205_v44, 0.0  ;;  %v1226_v58 = vadd.f32 %v2494_v45, %v2240_v39 }
 0x620   :  { %v1234_v49 = vadd.f32 %v1233_v48, %v1232_v46  ;;  %v1217_v50 = vpop.f32.mrf.mxu1 }
 0x621   :  { %v1218_v52 = vadd.f32 %v2240_v39, %v1217_v50  ;;  %v1243_v2 = vsel %vm252_vm1, %v1226_v58, 0.0 }
 0x622   :  { %v1236_v53 = vadd.f32 %v1235_v51, %v1234_v49  ;;  %v2495_v54 = vpop.f32.mrf.mxu1 }
 0x623   :  { %v1239_v59 = vsel %vm252_vm1, %v1218_v52, 0.0  ;;  %v1229_v63 = vadd.f32 %v2495_v54, %v2240_v39 }
 0x624   :  { %v1238_v56 = vadd.f32 %v1237_v55, %v1236_v53  ;;  %v1220_v57 = vpop.f32.mrf.mxu1 }
 0x625   :  { %v1221_v60 = vadd.f32 %v2240_v39, %v1220_v57  ;;  %v1245_v4 = vsel %vm252_vm1, %v1229_v63, 0.0  ;;  %v2248_v57 = vld [vmem:[%s2165_s21] ss:$0 sm:$0xff] }
 0x626   :  { %v1240_v61 = vadd.f32 %v1239_v59, %v1238_v56 }
 0x627   :  { %v1241_v0 = vsel %vm252_vm1, %v1221_v60, 0.0 }
 0x628   :  { %v1242_v1 = vadd.f32 %v1241_v0, %v1240_v61 }
 0x62a   :  { %v1244_v3 = vadd.f32 %v1243_v2, %v1242_v1 }
 0x62c   :  { %v1246_v5 = vadd.f32 %v1245_v4, %v1244_v3 }
 0x62e   :  { %v1247_v6 = vrot.slane %v1246_v5, 4 }
 0x630   :  { %v1248_v7 = vadd.f32 %v1247_v6, %v1246_v5 }
 0x632   :  { %v1249_v8 = vrot.slane %v1248_v7, 2 }
 0x634   :  { %v1250_v9 = vadd.f32 %v1249_v8, %v1248_v7 }
 0x636   :  { %v1251_v10 = vrot.slane %v1250_v9, 1 }
 0x638   :  { %v1252_v14 = vadd.f32 %v1251_v10, %v1250_v9 }
 0x63a   :  { %v1253_v62 = vmul.f32 0.015625, %v1252_v14 }
 0x63c   :  { %v1254_v15 = vsub.f32 %v1202_v41, %v1253_v62  ;;  %v1255_v16 = vsub.f32 %v1205_v44, %v1253_v62  ;;  %v1256_v17 = vsub.f32 %v1210_v43, %v1253_v62  ;;  %v1257_v11 = vsub.f32 %v1213_v47, %v1253_v62 }
 0x63d   :  { %v1258_v24 = vsub.f32 %v1218_v52, %v1253_v62  ;;  %v1259_v28 = vsub.f32 %v1221_v60, %v1253_v62  ;;  %v1260_v18 = vsub.f32 %v1226_v58, %v1253_v62  ;;  %v1261_v33 = vsub.f32 %v1229_v63, %v1253_v62  ;;  %v2247_v52 = vld [vmem:[%s2164_s17] ss:$0 sm:$0xff]  ;;  %s2970_s17 = sld [smem:[%s2980_s0 + %s2678_s14]]  }
 0x63e   :  { %v1262_v25 = vmul.f32 %v1254_v15, %v1254_v15  ;;  %v1263_v26 = vmul.f32 %v1255_v16, %v1255_v16  ;;  %v1264_v27 = vmul.f32 %v1256_v17, %v1256_v17  ;;  %v1265_v29 = vmul.f32 %v1257_v11, %v1257_v11 }
 0x63f   :  { %v1266_v13 = vmul.f32 %v1258_v24, %v1258_v24  ;;  %v1267_v34 = vmul.f32 %v1259_v28, %v1259_v28  ;;  %v1268_v37 = vmul.f32 %v1260_v18, %v1260_v18  ;;  %v1269_v21 = vmul.f32 %v1261_v33, %v1261_v33 }
 0x640   :  { %v1270_v30 = vsel %vm252_vm1, %v1262_v25, 0.0  ;;  %v1271_v31 = vsel %vm252_vm1, %v1263_v26, 0.0  ;;  %v1273_v19 = vsel %vm252_vm1, %v1264_v27, 0.0  ;;  %v1275_v35 = vsel %vm252_vm1, %v1265_v29, 0.0 }
 0x641   :  { %v1272_v12 = vadd.f32 %v1271_v31, %v1270_v30  ;;  %v1277_v38 = vsel %vm252_vm1, %v1266_v13, 0.0  ;;  %v1279_v22 = vsel %vm252_vm1, %v1267_v34, 0.0  ;;  %v1281_v39 = vsel %vm252_vm1, %v1268_v37, 0.0  ;;  %v2598_v13 = vld [vmem:[%s2170_s25 + $0x8] sm:$0xff]   ;;  %v2249_v34 = vld [vmem:[%s2167_s29] ss:$0 sm:$0xff] }
 0x642   :  { %v1283_v41 = vsel %vm252_vm1, %v1269_v21, 0.0  ;;  %2508 = vmatprep.subr.bf16.mxu1 %v2598_v13 }
 0x643   :  { %v1274_v32 = vadd.f32 %v1273_v19, %v1272_v12  ;;  %2509 = vmatpush3.bf16.msra.mxu1 %v2598_v13  ;;  %v2599_v19 = vld [vmem:[%s2170_s25] sm:$0xff]  }
 0x644   :  { %2510 = vmatprep.subr.bf16.mxu1 %v2599_v19 }
 0x645   :  { %v1276_v36 = vadd.f32 %v1275_v35, %v1274_v32 }
 0x647   :  { %v1278_v20 = vadd.f32 %v1277_v38, %v1276_v36  ;;  %2511 = vmatpush3.bf16.msra.mxu1 %v2599_v19 }
 0x649   :  { %v1280_v23 = vadd.f32 %v1279_v22, %v1278_v20 }
 0x64b   :  { %v1282_v40 = vadd.f32 %v1281_v39, %v1280_v23 }
 0x64d   :  { %v1284_v42 = vadd.f32 %v1283_v41, %v1282_v40 }
 0x64f   :  { %v1285_v43 = vrot.slane %v1284_v42, 4 }
 0x651   :  { %v1286_v44 = vadd.f32 %v1285_v43, %v1284_v42 }
 0x653   :  { %v1287_v45 = vrot.slane %v1286_v44, 2 }
 0x655   :  { %v1288_v46 = vadd.f32 %v1287_v45, %v1286_v44 }
 0x657   :  { %v1289_v47 = vrot.slane %v1288_v46, 1 }
 0x659   :  { %v1290_v48 = vadd.f32 %v1289_v47, %v1288_v46 }
 0x65b   :  { %v1291_v49 = vmul.f32 0.015625, %v1290_v48 }
 0x65d   :  { %v1292_v50 = vadd.f32 1e-05, %v1291_v49 }
 0x65f   :  { %2606 = vrsqrt.f32 %v1292_v50 }
 0x66c   :  { %v2607_v51 = vpop.eup %2606 }
 0x66d   :  { %v1296_v53 = vmul.f32 %v2607_v51, %v1256_v17  ;;  %v1297_v54 = vmul.f32 %v2607_v51, %v1257_v11  ;;  %v1299_v55 = vmul.f32 %v2607_v51, %v1259_v28  ;;  %v1294_v56 = vmul.f32 %v2607_v51, %v1254_v15 }
 0x66e   :  { %v1295_v58 = vmul.f32 %v2607_v51, %v1255_v16  ;;  %v1298_v59 = vmul.f32 %v2607_v51, %v1258_v24  ;;  %v1300_v60 = vmul.f32 %v2607_v51, %v1260_v18  ;;  %v1301_v61 = vmul.f32 %v2607_v51, %v1261_v33 }
 0x66f   :  { %v1312_v63 = vmul.f32 %v2247_v52, %v1297_v54  ;;  %v1314_v0 = vmul.f32 %v2247_v52, %v1299_v55  ;;  %v1309_v1 = vmul.f32 %v2247_v52, %v1294_v56  ;;  %v1311_v2 = vmul.f32 %v2247_v52, %v1296_v53 }
 0x670   :  { %v1310_v3 = vmul.f32 %v2247_v52, %v1295_v58  ;;  %v1313_v4 = vmul.f32 %v2247_v52, %v1298_v59  ;;  %v1315_v14 = vmul.f32 %v2247_v52, %v1300_v60  ;;  %v1316_v16 = vmul.f32 %v2247_v52, %v1301_v61 }
 0x671   :  { %v1329_v5 = vadd.f32 %v2248_v57, %v1314_v0  ;;  %v1324_v6 = vadd.f32 %v2248_v57, %v1309_v1  ;;  %v1326_v7 = vadd.f32 %v2248_v57, %v1311_v2  ;;  %v1327_v8 = vadd.f32 %v2248_v57, %v1312_v63 }
 0x672   :  { %v1325_v9 = vadd.f32 %v2248_v57, %v1310_v3  ;;  %v1328_v10 = vadd.f32 %v2248_v57, %v1313_v4  ;;  %v1330_v28 = vadd.f32 %v2248_v57, %v1315_v14  ;;  %v1331_v29 = vadd.f32 %v2248_v57, %v1316_v16 }
 0x673   :  { %v1332_v62 = vmax.f32 %v1324_v6, 0.0  ;;  %v1334_v15 = vmax.f32 %v1326_v7, 0.0  ;;  %v1335_v17 = vmax.f32 %v1327_v8, 0.0  ;;  %v1337_v11 = vmax.f32 %v1329_v5, 0.0 }
 0x674   :  { %v1333_v24 = vmax.f32 %v1325_v9, 0.0  ;;  %v1336_v25 = vmax.f32 %v1328_v10, 0.0  ;;  %v1338_v31 = vmax.f32 %v1330_v28, 0.0  ;;  %v1339_v12 = vmax.f32 %v1331_v29, 0.0 }
 0x675   :  { %v1341_v26 = vpack.c.bf16 %v1335_v17, %v1334_v15 }
 0x676   :  { %v1340_v27 = vpack.c.bf16 %v1333_v24, %v1332_v62  ;;  %v1342_v30 = vpack.c.bf16 %v1337_v11, %v1336_v25  ;;  %v1343_v18 = vpack.c.bf16 %v1339_v12, %v1338_v31 }
 0x678   :  { %2500 = vmatprep.mubr.msk.bf16.mxu0 %vm252_vm1, %v1340_v27 }
 0x679   :  { %2501 = vmatmul.mubr.msk.bf16.vlgmr.msra.gmra.mxu0 %vm252_vm1, %v1341_v26 }
 0x67a   :  { %2504 = vmatprep.mubr.msk.bf16.mxu0 %vm252_vm1, %v1342_v30 }
 0x681   :  { %2505 = vmatmul.mubr.msk.bf16.gmra.mxu0 %vm252_vm1, %v1343_v18 }
 0x739   :  { %v2502_v32 = vpop.f32.mrf.mxu0 }
 0x73a   :  { %v1422_v38 = vadd.f32 %v2502_v32, %v2249_v34 }
 0x73b   :  { %v1413_v33 = vpop.f32.mrf.mxu0 }
 0x73c   :  { %v1414_v36 = vadd.f32 %v2249_v34, %v1413_v33  ;;  %v1447_v42 = vsel %vm252_vm1, %v1422_v38, 0.0 }
 0x73d   :  { %v2503_v35 = vpop.f32.mrf.mxu0 }
 0x73e   :  { %v1444_v22 = vsel %vm252_vm1, %v1414_v36, 0.0  ;;  %v1425_v23 = vadd.f32 %v2503_v35, %v2249_v34 }
 0x73f   :  { %v1416_v37 = vpop.f32.mrf.mxu0 }
 0x740   :  { %v1417_v20 = vadd.f32 %v2249_v34, %v1416_v37  ;;  %v1449_v46 = vsel %vm252_vm1, %v1425_v23, 0.0 }
 0x741   :  { %v2506_v21 = vpop.f32.mrf.mxu0 }
 0x742   :  { %v1445_v39 = vsel %vm252_vm1, %v1417_v20, 0.0  ;;  %v1438_v49 = vadd.f32 %v2506_v21, %v2249_v34 }
 0x743   :  { %v1446_v40 = vadd.f32 %v1445_v39, %v1444_v22  ;;  %v1429_v41 = vpop.f32.mrf.mxu0 }
 0x744   :  { %v1430_v43 = vadd.f32 %v2249_v34, %v1429_v41  ;;  %v1455_v56 = vsel %vm252_vm1, %v1438_v49, 0.0 }
 0x745   :  { %v1448_v44 = vadd.f32 %v1447_v42, %v1446_v40  ;;  %v2507_v45 = vpop.f32.mrf.mxu0 }
 0x746   :  { %v1451_v50 = vsel %vm252_vm1, %v1430_v43, 0.0  ;;  %v1441_v53 = vadd.f32 %v2507_v45, %v2249_v34 }
 0x747   :  { %v1450_v47 = vadd.f32 %v1449_v46, %v1448_v44  ;;  %v1432_v48 = vpop.f32.mrf.mxu0 }
 0x748   :  { %v1433_v51 = vadd.f32 %v2249_v34, %v1432_v48  ;;  %v1457_v58 = vsel %vm252_vm1, %v1441_v53, 0.0  ;;  %v2257_v48 = vld [vmem:[%s2169_s7] ss:$0 sm:$0xff] }
 0x749   :  { %v1452_v52 = vadd.f32 %v1451_v50, %v1450_v47 }
 0x74a   :  { %v1453_v54 = vsel %vm252_vm1, %v1433_v51, 0.0 }
 0x74b   :  { %v1454_v55 = vadd.f32 %v1453_v54, %v1452_v52 }
 0x74d   :  { %v1456_v57 = vadd.f32 %v1455_v56, %v1454_v55 }
 0x74f   :  { %v1458_v59 = vadd.f32 %v1457_v58, %v1456_v57 }
 0x751   :  { %v1459_v60 = vrot.slane %v1458_v59, 4 }
 0x753   :  { %v1460_v61 = vadd.f32 %v1459_v60, %v1458_v59 }
 0x755   :  { %v1461_v63 = vrot.slane %v1460_v61, 2 }
 0x757   :  { %v1462_v0 = vadd.f32 %v1461_v63, %v1460_v61 }
 0x759   :  { %v1463_v1 = vrot.slane %v1462_v0, 1 }
 0x75b   :  { %v1464_v2 = vadd.f32 %v1463_v1, %v1462_v0 }
 0x75d   :  { %v1465_v3 = vmul.f32 0.015625, %v1464_v2 }
 0x75f   :  { %v1466_v4 = vsub.f32 %v1414_v36, %v1465_v3  ;;  %v1467_v5 = vsub.f32 %v1417_v20, %v1465_v3  ;;  %v1468_v6 = vsub.f32 %v1422_v38, %v1465_v3  ;;  %v1469_v7 = vsub.f32 %v1425_v23, %v1465_v3 }
 0x760   :  { %v1470_v8 = vsub.f32 %v1430_v43, %v1465_v3  ;;  %v1471_v62 = vsub.f32 %v1433_v51, %v1465_v3  ;;  %v1472_v24 = vsub.f32 %v1438_v49, %v1465_v3  ;;  %v1473_v28 = vsub.f32 %v1441_v53, %v1465_v3  ;;  %v2256_v43 = vld [vmem:[%s2168_s3] ss:$0 sm:$0xff] }
 0x761   :  { %v1474_v9 = vmul.f32 %v1466_v4, %v1466_v4  ;;  %v1475_v10 = vmul.f32 %v1467_v5, %v1467_v5  ;;  %v1476_v14 = vmul.f32 %v1468_v6, %v1468_v6  ;;  %v1477_v15 = vmul.f32 %v1469_v7, %v1469_v7 }
 0x762   :  { %v1478_v25 = vmul.f32 %v1470_v8, %v1470_v8  ;;  %v1479_v29 = vmul.f32 %v1471_v62, %v1471_v62  ;;  %v1480_v12 = vmul.f32 %v1472_v24, %v1472_v24  ;;  %v1481_v19 = vmul.f32 %v1473_v28, %v1473_v28 }
 0x763   :  { %v1482_v17 = vsel %vm252_vm1, %v1474_v9, 0.0  ;;  %v1483_v16 = vsel %vm252_vm1, %v1475_v10, 0.0  ;;  %v1485_v26 = vsel %vm252_vm1, %v1476_v14, 0.0  ;;  %v1487_v30 = vsel %vm252_vm1, %v1477_v15, 0.0 }
 0x764   :  { %v1484_v11 = vadd.f32 %v1483_v16, %v1482_v17  ;;  %v1489_v18 = vsel %vm252_vm1, %v1478_v25, 0.0  ;;  %v1491_v32 = vsel %vm252_vm1, %v1479_v29, 0.0  ;;  %v1493_v34 = vsel %vm252_vm1, %v1480_v12, 0.0  ;;  %v2600_v25 = vld [vmem:[%s2174_s11 + $0x8] sm:$0xff]   ;;  %v2258_v29 = vld [vmem:[%s2171_s15] ss:$0 sm:$0xff] }
 0x765   :  { %v1495_v36 = vsel %vm252_vm1, %v1481_v19, 0.0  ;;  %2520 = vmatprep.subr.bf16.mxu0 %v2600_v25 }
 0x766   :  { %v1486_v27 = vadd.f32 %v1485_v26, %v1484_v11  ;;  %2521 = vmatpush3.bf16.msra.mxu0 %v2600_v25  ;;  %v2601_v26 = vld [vmem:[%s2174_s11] sm:$0xff]  }
 0x767   :  { %2522 = vmatprep.subr.bf16.mxu0 %v2601_v26 }
 0x768   :  { %v1488_v31 = vadd.f32 %v1487_v30, %v1486_v27 }
 0x76a   :  { %v1490_v13 = vadd.f32 %v1489_v18, %v1488_v31  ;;  %2523 = vmatpush3.bf16.msra.mxu0 %v2601_v26 }
 0x76c   :  { %v1492_v33 = vadd.f32 %v1491_v32, %v1490_v13 }
 0x76e   :  { %v1494_v35 = vadd.f32 %v1493_v34, %v1492_v33 }
 0x770   :  { %v1496_v37 = vadd.f32 %v1495_v36, %v1494_v35 }
 0x772   :  { %v1497_v38 = vrot.slane %v1496_v37, 4 }
 0x774   :  { %v1498_v20 = vadd.f32 %v1497_v38, %v1496_v37 }
 0x776   :  { %v1499_v21 = vrot.slane %v1498_v20, 2 }
 0x778   :  { %v1500_v22 = vadd.f32 %v1499_v21, %v1498_v20 }
 0x77a   :  { %v1501_v23 = vrot.slane %v1500_v22, 1 }
 0x77c   :  { %v1502_v39 = vadd.f32 %v1501_v23, %v1500_v22 }
 0x77e   :  { %v1503_v40 = vmul.f32 0.015625, %v1502_v39 }
 0x780   :  { %v1504_v41 = vadd.f32 1e-05, %v1503_v40 }
 0x782   :  { %2608 = vrsqrt.f32 %v1504_v41 }
 0x78f   :  { %v2609_v42 = vpop.eup %2608 }
 0x790   :  { %v1508_v44 = vmul.f32 %v2609_v42, %v1468_v6  ;;  %v1509_v45 = vmul.f32 %v2609_v42, %v1469_v7  ;;  %v1511_v46 = vmul.f32 %v2609_v42, %v1471_v62  ;;  %v1506_v47 = vmul.f32 %v2609_v42, %v1466_v4 }
 0x791   :  { %v1507_v49 = vmul.f32 %v2609_v42, %v1467_v5  ;;  %v1510_v50 = vmul.f32 %v2609_v42, %v1470_v8  ;;  %v1512_v51 = vmul.f32 %v2609_v42, %v1472_v24  ;;  %v1513_v52 = vmul.f32 %v2609_v42, %v1473_v28 }
 0x792   :  { %v1524_v53 = vmul.f32 %v2256_v43, %v1509_v45  ;;  %v1526_v54 = vmul.f32 %v2256_v43, %v1511_v46  ;;  %v1521_v55 = vmul.f32 %v2256_v43, %v1506_v47  ;;  %v1523_v56 = vmul.f32 %v2256_v43, %v1508_v44 }
 0x793   :  { %v1522_v57 = vmul.f32 %v2256_v43, %v1507_v49  ;;  %v1525_v58 = vmul.f32 %v2256_v43, %v1510_v50  ;;  %v1527_v2 = vmul.f32 %v2256_v43, %v1512_v51  ;;  %v1528_v5 = vmul.f32 %v2256_v43, %v1513_v52 }
 0x794   :  { %v1541_v59 = vadd.f32 %v2257_v48, %v1526_v54  ;;  %v1536_v60 = vadd.f32 %v2257_v48, %v1521_v55  ;;  %v1538_v61 = vadd.f32 %v2257_v48, %v1523_v56  ;;  %v1539_v63 = vadd.f32 %v2257_v48, %v1524_v53 }
 0x795   :  { %v1537_v0 = vadd.f32 %v2257_v48, %v1522_v57  ;;  %v1540_v1 = vadd.f32 %v2257_v48, %v1525_v58  ;;  %v1542_v62 = vadd.f32 %v2257_v48, %v1527_v2  ;;  %v1543_v15 = vadd.f32 %v2257_v48, %v1528_v5 }
 0x796   :  { %v1544_v3 = vmax.f32 %v1536_v60, 0.0  ;;  %v1546_v4 = vmax.f32 %v1538_v61, 0.0  ;;  %v1547_v6 = vmax.f32 %v1539_v63, 0.0  ;;  %v1549_v7 = vmax.f32 %v1541_v59, 0.0 }
 0x797   :  { %v1545_v8 = vmax.f32 %v1537_v0, 0.0  ;;  %v1548_v9 = vmax.f32 %v1540_v1, 0.0  ;;  %v1550_v16 = vmax.f32 %v1542_v62, 0.0  ;;  %v1551_v11 = vmax.f32 %v1543_v15, 0.0 }
 0x798   :  { %v1553_v10 = vpack.c.bf16 %v1547_v6, %v1546_v4 }
 0x799   :  { %v1552_v14 = vpack.c.bf16 %v1545_v8, %v1544_v3  ;;  %v1554_v17 = vpack.c.bf16 %v1549_v7, %v1548_v9  ;;  %v1555_v24 = vpack.c.bf16 %v1551_v11, %v1550_v16 }
 0x79b   :  { %2512 = vmatprep.mubr.msk.bf16.mxu1 %vm252_vm1, %v1552_v14 }
 0x79c   :  { %2513 = vmatmul.mubr.msk.bf16.vlgmr.msra.gmra.mxu1 %vm252_vm1, %v1553_v10 }
 0x79d   :  { %2516 = vmatprep.mubr.msk.bf16.mxu1 %vm252_vm1, %v1554_v17 }
 0x7a4   :  { %2517 = vmatmul.mubr.msk.bf16.gmra.mxu1 %vm252_vm1, %v1555_v24 }
 0x85c   :  { %v2514_v27 = vpop.f32.mrf.mxu1 }
 0x85d   :  { %v1634_v18 = vadd.f32 %v2514_v27, %v2258_v29 }
 0x85e   :  { %v1625_v28 = vpop.f32.mrf.mxu1 }
 0x85f   :  { %v1626_v31 = vadd.f32 %v2258_v29, %v1625_v28  ;;  %v1659_v37 = vsel %vm252_vm1, %v1634_v18, 0.0 }
 0x860   :  { %v2515_v30 = vpop.f32.mrf.mxu1 }
 0x861   :  { %v1656_v32 = vsel %vm252_vm1, %v1626_v31, 0.0  ;;  %v1637_v33 = vadd.f32 %v2515_v30, %v2258_v29 }
 0x862   :  { %v1628_v12 = vpop.f32.mrf.mxu1 }
 0x863   :  { %v1629_v13 = vadd.f32 %v2258_v29, %v1628_v12  ;;  %v1661_v22 = vsel %vm252_vm1, %v1637_v33, 0.0 }
 0x864   :  { %v2518_v19 = vpop.f32.mrf.mxu1 }
 0x865   :  { %v1657_v34 = vsel %vm252_vm1, %v1629_v13, 0.0  ;;  %v1650_v40 = vadd.f32 %v2518_v19, %v2258_v29 }
 0x866   :  { %v1658_v35 = vadd.f32 %v1657_v34, %v1656_v32  ;;  %v1641_v36 = vpop.f32.mrf.mxu1 }
 0x867   :  { %v1642_v38 = vadd.f32 %v2258_v29, %v1641_v36  ;;  %v1667_v47 = vsel %vm252_vm1, %v1650_v40, 0.0 }
 0x868   :  { %v1660_v20 = vadd.f32 %v1659_v37, %v1658_v35  ;;  %v2519_v21 = vpop.f32.mrf.mxu1 }
 0x869   :  { %v1663_v41 = vsel %vm252_vm1, %v1642_v38, 0.0  ;;  %v1653_v44 = vadd.f32 %v2519_v21, %v2258_v29 }
 0x86a   :  { %v1662_v23 = vadd.f32 %v1661_v22, %v1660_v20  ;;  %v1644_v39 = vpop.f32.mrf.mxu1 }
 0x86b   :  { %v1645_v42 = vadd.f32 %v2258_v29, %v1644_v39  ;;  %v1669_v49 = vsel %vm252_vm1, %v1653_v44, 0.0  ;;  %v2266_v39 = vld [vmem:[%s2173_s23] ss:$0 sm:$0xff] }
 0x86c   :  { %v1664_v43 = vadd.f32 %v1663_v41, %v1662_v23 }
 0x86d   :  { %v1665_v45 = vsel %vm252_vm1, %v1645_v42, 0.0 }
 0x86e   :  { %v1666_v46 = vadd.f32 %v1665_v45, %v1664_v43 }
 0x870   :  { %v1668_v48 = vadd.f32 %v1667_v47, %v1666_v46 }
 0x872   :  { %v1670_v50 = vadd.f32 %v1669_v49, %v1668_v48 }
 0x874   :  { %v1671_v51 = vrot.slane %v1670_v50, 4 }
 0x876   :  { %v1672_v52 = vadd.f32 %v1671_v51, %v1670_v50 }
 0x878   :  { %v1673_v53 = vrot.slane %v1672_v52, 2 }
 0x87a   :  { %v1674_v54 = vadd.f32 %v1673_v53, %v1672_v52 }
 0x87c   :  { %v1675_v55 = vrot.slane %v1674_v54, 1 }
 0x87e   :  { %v1676_v56 = vadd.f32 %v1675_v55, %v1674_v54 }
 0x880   :  { %v1677_v57 = vmul.f32 0.015625, %v1676_v56 }
 0x882   :  { %v1678_v58 = vsub.f32 %v1626_v31, %v1677_v57  ;;  %v1679_v59 = vsub.f32 %v1629_v13, %v1677_v57  ;;  %v1680_v60 = vsub.f32 %v1634_v18, %v1677_v57  ;;  %v1681_v61 = vsub.f32 %v1637_v33, %v1677_v57 }
 0x883   :  { %v1682_v63 = vsub.f32 %v1642_v38, %v1677_v57  ;;  %v1683_v3 = vsub.f32 %v1645_v42, %v1677_v57  ;;  %v1684_v8 = vsub.f32 %v1650_v40, %v1677_v57  ;;  %v1685_v62 = vsub.f32 %v1653_v44, %v1677_v57  ;;  %v2265_v38 = vld [vmem:[%s2172_s19] ss:$0 sm:$0xff] }
 0x884   :  { %v1686_v0 = vmul.f32 %v1678_v58, %v1678_v58  ;;  %v1687_v1 = vmul.f32 %v1679_v59, %v1679_v59  ;;  %v1688_v2 = vmul.f32 %v1680_v60, %v1680_v60  ;;  %v1689_v4 = vmul.f32 %v1681_v61, %v1681_v61 }
 0x885   :  { %v1690_v9 = vmul.f32 %v1682_v63, %v1682_v63  ;;  %v1691_v15 = vmul.f32 %v1683_v3, %v1683_v3  ;;  %v1692_v11 = vmul.f32 %v1684_v8, %v1684_v8  ;;  %v1693_v26 = vmul.f32 %v1685_v62, %v1685_v62 }
 0x886   :  { %v1694_v6 = vsel %vm252_vm1, %v1686_v0, 0.0  ;;  %v1695_v5 = vsel %vm252_vm1, %v1687_v1, 0.0  ;;  %v1697_v10 = vsel %vm252_vm1, %v1688_v2, 0.0  ;;  %v1699_v17 = vsel %vm252_vm1, %v1689_v4, 0.0 }
 0x887   :  { %v1696_v7 = vadd.f32 %v1695_v5, %v1694_v6  ;;  %v1701_v24 = vsel %vm252_vm1, %v1690_v9, 0.0  ;;  %v1703_v27 = vsel %vm252_vm1, %v1691_v15, 0.0  ;;  %v1705_v29 = vsel %vm252_vm1, %v1692_v11, 0.0  ;;  %v2602_v9 = vld [vmem:[%s2178_s27 + $0x8] sm:$0xff]   ;;  %v2267_v15 = vld [vmem:[%s2175_s1] ss:$0 sm:$0xff] }
 0x888   :  { %v1707_v31 = vsel %vm252_vm1, %v1693_v26, 0.0  ;;  %2532 = vmatprep.subr.bf16.mxu1 %v2602_v9 }
 0x889   :  { %v1698_v14 = vadd.f32 %v1697_v10, %v1696_v7  ;;  %2533 = vmatpush3.bf16.msra.mxu1 %v2602_v9  ;;  %v2603_v10 = vld [vmem:[%s2178_s27] sm:$0xff]  }
 0x88a   :  { %2534 = vmatprep.subr.bf16.mxu1 %v2603_v10 }
 0x88b   :  { %v1700_v16 = vadd.f32 %v1699_v17, %v1698_v14 }
 0x88d   :  { %v1702_v25 = vadd.f32 %v1701_v24, %v1700_v16  ;;  %2535 = vmatpush3.bf16.msra.mxu1 %v2603_v10 }
 0x88f   :  { %v1704_v28 = vadd.f32 %v1703_v27, %v1702_v25 }
 0x891   :  { %v1706_v30 = vadd.f32 %v1705_v29, %v1704_v28 }
 0x893   :  { %v1708_v12 = vadd.f32 %v1707_v31, %v1706_v30 }
 0x895   :  { %v1709_v18 = vrot.slane %v1708_v12, 4 }
 0x897   :  { %v1710_v13 = vadd.f32 %v1709_v18, %v1708_v12 }
 0x899   :  { %v1711_v19 = vrot.slane %v1710_v13, 2 }
 0x89b   :  { %v1712_v32 = vadd.f32 %v1711_v19, %v1710_v13 }
 0x89d   :  { %v1713_v33 = vrot.slane %v1712_v32, 1 }
 0x89f   :  { %v1714_v34 = vadd.f32 %v1713_v33, %v1712_v32 }
 0x8a1   :  { %v1715_v35 = vmul.f32 0.015625, %v1714_v34 }
 0x8a3   :  { %v1716_v36 = vadd.f32 1e-05, %v1715_v35 }
 0x8a5   :  { %2610 = vrsqrt.f32 %v1716_v36 }
 0x8b2   :  { %v2611_v37 = vpop.eup %2610 }
 0x8b3   :  { %v1720_v20 = vmul.f32 %v2611_v37, %v1680_v60  ;;  %v1721_v21 = vmul.f32 %v2611_v37, %v1681_v61  ;;  %v1723_v22 = vmul.f32 %v2611_v37, %v1683_v3  ;;  %v1718_v23 = vmul.f32 %v2611_v37, %v1678_v58 }
 0x8b4   :  { %v1719_v40 = vmul.f32 %v2611_v37, %v1679_v59  ;;  %v1722_v41 = vmul.f32 %v2611_v37, %v1682_v63  ;;  %v1724_v42 = vmul.f32 %v2611_v37, %v1684_v8  ;;  %v1725_v43 = vmul.f32 %v2611_v37, %v1685_v62 }
 0x8b5   :  { %v1736_v44 = vmul.f32 %v2265_v38, %v1721_v21  ;;  %v1738_v45 = vmul.f32 %v2265_v38, %v1723_v22  ;;  %v1733_v46 = vmul.f32 %v2265_v38, %v1718_v23  ;;  %v1735_v47 = vmul.f32 %v2265_v38, %v1720_v20 }
 0x8b6   :  { %v1734_v48 = vmul.f32 %v2265_v38, %v1719_v40  ;;  %v1737_v49 = vmul.f32 %v2265_v38, %v1722_v41  ;;  %v1739_v56 = vmul.f32 %v2265_v38, %v1724_v42  ;;  %v1740_v59 = vmul.f32 %v2265_v38, %v1725_v43 }
 0x8b7   :  { %v1753_v50 = vadd.f32 %v2266_v39, %v1738_v45  ;;  %v1748_v51 = vadd.f32 %v2266_v39, %v1733_v46  ;;  %v1750_v52 = vadd.f32 %v2266_v39, %v1735_v47  ;;  %v1751_v53 = vadd.f32 %v2266_v39, %v1736_v44 }
 0x8b8   :  { %v1749_v54 = vadd.f32 %v2266_v39, %v1734_v48  ;;  %v1752_v55 = vadd.f32 %v2266_v39, %v1737_v49  ;;  %v1754_v3 = vadd.f32 %v2266_v39, %v1739_v56  ;;  %v1755_v4 = vadd.f32 %v2266_v39, %v1740_v59 }
 0x8b9   :  { %v1756_v57 = vmax.f32 %v1748_v51, 0.0  ;;  %v1758_v58 = vmax.f32 %v1750_v52, 0.0  ;;  %v1759_v60 = vmax.f32 %v1751_v53, 0.0  ;;  %v1761_v61 = vmax.f32 %v1753_v50, 0.0 }
 0x8ba   :  { %v1757_v63 = vmax.f32 %v1749_v54, 0.0  ;;  %v1760_v0 = vmax.f32 %v1752_v55, 0.0  ;;  %v1762_v5 = vmax.f32 %v1754_v3, 0.0  ;;  %v1763_v7 = vmax.f32 %v1755_v4, 0.0 }
 0x8bb   :  { %v1765_v1 = vpack.c.bf16 %v1759_v60, %v1758_v58 }
 0x8bc   :  { %v1764_v2 = vpack.c.bf16 %v1757_v63, %v1756_v57  ;;  %v1766_v6 = vpack.c.bf16 %v1761_v61, %v1760_v0  ;;  %v1767_v8 = vpack.c.bf16 %v1763_v7, %v1762_v5 }
 0x8be   :  { %2524 = vmatprep.mubr.msk.bf16.mxu0 %vm252_vm1, %v1764_v2 }
 0x8bf   :  { %2525 = vmatmul.mubr.msk.bf16.vlgmr.msra.gmra.mxu0 %vm252_vm1, %v1765_v1 }
 0x8c0   :  { %2528 = vmatprep.mubr.msk.bf16.mxu0 %vm252_vm1, %v1766_v6 }
 0x8c7   :  { %2529 = vmatmul.mubr.msk.bf16.gmra.mxu0 %vm252_vm1, %v1767_v8 }
 0x97f   :  { %v2526_v14 = vpop.f32.mrf.mxu0 }
 0x980   :  { %v1846_v24 = vadd.f32 %v2526_v14, %v2267_v15 }
 0x981   :  { %v1837_v62 = vpop.f32.mrf.mxu0 }
 0x982   :  { %v1838_v16 = vadd.f32 %v2267_v15, %v1837_v62  ;;  %v1871_v12 = vsel %vm252_vm1, %v1846_v24, 0.0 }
 0x983   :  { %v2527_v17 = vpop.f32.mrf.mxu0 }
 0x984   :  { %v1868_v27 = vsel %vm252_vm1, %v1838_v16, 0.0  ;;  %v1849_v28 = vadd.f32 %v2527_v17, %v2267_v15 }
 0x985   :  { %v1840_v11 = vpop.f32.mrf.mxu0 }
 0x986   :  { %v1841_v25 = vadd.f32 %v2267_v15, %v1840_v11  ;;  %v1873_v32 = vsel %vm252_vm1, %v1849_v28, 0.0 }
 0x987   :  { %v2530_v26 = vpop.f32.mrf.mxu0 }
 0x988   :  { %v1869_v29 = vsel %vm252_vm1, %v1841_v25, 0.0  ;;  %v1862_v35 = vadd.f32 %v2530_v26, %v2267_v15 }
 0x989   :  { %v1870_v30 = vadd.f32 %v1869_v29, %v1868_v27  ;;  %v1853_v31 = vpop.f32.mrf.mxu0 }
 0x98a   :  { %v1854_v18 = vadd.f32 %v2267_v15, %v1853_v31  ;;  %v1879_v23 = vsel %vm252_vm1, %v1862_v35, 0.0 }
 0x98b   :  { %v1872_v13 = vadd.f32 %v1871_v12, %v1870_v30  ;;  %v2531_v19 = vpop.f32.mrf.mxu0 }
 0x98c   :  { %v1875_v36 = vsel %vm252_vm1, %v1854_v18, 0.0  ;;  %v1865_v20 = vadd.f32 %v2531_v19, %v2267_v15 }
 0x98d   :  { %v1874_v33 = vadd.f32 %v1873_v32, %v1872_v13  ;;  %v1856_v34 = vpop.f32.mrf.mxu0 }
 0x98e   :  { %v1857_v37 = vadd.f32 %v2267_v15, %v1856_v34  ;;  %v1881_v40 = vsel %vm252_vm1, %v1865_v20, 0.0  ;;  %v2275_v34 = vld [vmem:[%s2177_s9] ss:$0 sm:$0xff] }
 0x98f   :  { %v1876_v38 = vadd.f32 %v1875_v36, %v1874_v33 }
 0x990   :  { %v1877_v21 = vsel %vm252_vm1, %v1857_v37, 0.0 }
 0x991   :  { %v1878_v22 = vadd.f32 %v1877_v21, %v1876_v38 }
 0x993   :  { %v1880_v39 = vadd.f32 %v1879_v23, %v1878_v22 }
 0x995   :  { %v1882_v41 = vadd.f32 %v1881_v40, %v1880_v39 }
 0x997   :  { %v1883_v42 = vrot.slane %v1882_v41, 4 }
 0x999   :  { %v1884_v43 = vadd.f32 %v1883_v42, %v1882_v41 }
 0x99b   :  { %v1885_v44 = vrot.slane %v1884_v43, 2 }
 0x99d   :  { %v1886_v45 = vadd.f32 %v1885_v44, %v1884_v43 }
 0x99f   :  { %v1887_v46 = vrot.slane %v1886_v45, 1 }
 0x9a1   :  { %v1888_v47 = vadd.f32 %v1887_v46, %v1886_v45 }
 0x9a3   :  { %v1889_v48 = vmul.f32 0.015625, %v1888_v47 }
 0x9a5   :  { %v1890_v49 = vsub.f32 %v1838_v16, %v1889_v48  ;;  %v1891_v50 = vsub.f32 %v1841_v25, %v1889_v48  ;;  %v1892_v51 = vsub.f32 %v1846_v24, %v1889_v48  ;;  %v1893_v52 = vsub.f32 %v1849_v28, %v1889_v48 }
 0x9a6   :  { %v1894_v53 = vsub.f32 %v1854_v18, %v1889_v48  ;;  %v1895_v57 = vsub.f32 %v1857_v37, %v1889_v48  ;;  %v1896_v63 = vsub.f32 %v1862_v35, %v1889_v48  ;;  %v1897_v3 = vsub.f32 %v1865_v20, %v1889_v48  ;;  %v2274_v18 = vld [vmem:[%s2176_s5] ss:$0 sm:$0xff] }
 0x9a7   :  { %v1898_v54 = vmul.f32 %v1890_v49, %v1890_v49  ;;  %v1899_v55 = vmul.f32 %v1891_v50, %v1891_v50  ;;  %v1900_v56 = vmul.f32 %v1892_v51, %v1892_v51  ;;  %v1901_v58 = vmul.f32 %v1893_v52, %v1893_v52 }
 0x9a8   :  { %v1902_v0 = vmul.f32 %v1894_v53, %v1894_v53  ;;  %v1903_v4 = vmul.f32 %v1895_v57, %v1895_v57  ;;  %v1904_v7 = vmul.f32 %v1896_v63, %v1896_v63  ;;  %v1905_v10 = vmul.f32 %v1897_v3, %v1897_v3 }
 0x9a9   :  { %v1906_v60 = vsel %vm252_vm1, %v1898_v54, 0.0  ;;  %v1907_v59 = vsel %vm252_vm1, %v1899_v55, 0.0  ;;  %v1909_v1 = vsel %vm252_vm1, %v1900_v56, 0.0  ;;  %v1911_v6 = vsel %vm252_vm1, %v1901_v58, 0.0 }
 0x9aa   :  { %v1908_v61 = vadd.f32 %v1907_v59, %v1906_v60  ;;  %v1913_v8 = vsel %vm252_vm1, %v1902_v0, 0.0  ;;  %v1915_v14 = vsel %vm252_vm1, %v1903_v4, 0.0  ;;  %v1917_v15 = vsel %vm252_vm1, %v1904_v7, 0.0  ;;  %v2276_v0 = vld [vmem:[%s2179_s13] ss:$0 sm:$0xff] }
 0x9ab   :  { %v1919_v16 = vsel %vm252_vm1, %v1905_v10, 0.0 }
 0x9ac   :  { %v1910_v2 = vadd.f32 %v1909_v1, %v1908_v61 }
 0x9ae   :  { %v1912_v5 = vadd.f32 %v1911_v6, %v1910_v2 }
 0x9b0   :  { %v1914_v9 = vadd.f32 %v1913_v8, %v1912_v5 }
 0x9b2   :  { %v1916_v62 = vadd.f32 %v1915_v14, %v1914_v9 }
 0x9b4   :  { %v1918_v17 = vadd.f32 %v1917_v15, %v1916_v62 }
 0x9b6   :  { %v1920_v11 = vadd.f32 %v1919_v16, %v1918_v17 }
 0x9b8   :  { %v1921_v24 = vrot.slane %v1920_v11, 4 }
 0x9ba   :  { %v1922_v25 = vadd.f32 %v1921_v24, %v1920_v11 }
 0x9bc   :  { %v1923_v26 = vrot.slane %v1922_v25, 2 }
 0x9be   :  { %v1924_v27 = vadd.f32 %v1923_v26, %v1922_v25 }
 0x9c0   :  { %v1925_v28 = vrot.slane %v1924_v27, 1 }
 0x9c2   :  { %v1926_v29 = vadd.f32 %v1925_v28, %v1924_v27 }
 0x9c4   :  { %v1927_v30 = vmul.f32 0.015625, %v1926_v29 }
 0x9c6   :  { %v1928_v31 = vadd.f32 1e-05, %v1927_v30 }
 0x9c8   :  { %2612 = vrsqrt.f32 %v1928_v31 }
 0x9d5   :  { %v2613_v12 = vpop.eup %2612 }
 0x9d6   :  { %v1932_v13 = vmul.f32 %v2613_v12, %v1892_v51  ;;  %v1933_v19 = vmul.f32 %v2613_v12, %v1893_v52  ;;  %v1935_v32 = vmul.f32 %v2613_v12, %v1895_v57  ;;  %v1930_v33 = vmul.f32 %v2613_v12, %v1890_v49 }
 0x9d7   :  { %v1931_v35 = vmul.f32 %v2613_v12, %v1891_v50  ;;  %v1934_v36 = vmul.f32 %v2613_v12, %v1894_v53  ;;  %v1936_v37 = vmul.f32 %v2613_v12, %v1896_v63  ;;  %v1937_v38 = vmul.f32 %v2613_v12, %v1897_v3 }
 0x9d8   :  { %v1948_v20 = vmul.f32 %v2274_v18, %v1933_v19  ;;  %v1950_v21 = vmul.f32 %v2274_v18, %v1935_v32  ;;  %v1945_v22 = vmul.f32 %v2274_v18, %v1930_v33  ;;  %v1947_v23 = vmul.f32 %v2274_v18, %v1932_v13 }
 0x9d9   :  { %v1946_v39 = vmul.f32 %v2274_v18, %v1931_v35  ;;  %v1949_v40 = vmul.f32 %v2274_v18, %v1934_v36  ;;  %v1951_v47 = vmul.f32 %v2274_v18, %v1936_v37  ;;  %v1952_v50 = vmul.f32 %v2274_v18, %v1937_v38 }
 0x9da   :  { %v1965_v41 = vadd.f32 %v2275_v34, %v1950_v21  ;;  %v1960_v42 = vadd.f32 %v2275_v34, %v1945_v22  ;;  %v1962_v43 = vadd.f32 %v2275_v34, %v1947_v23  ;;  %v1963_v44 = vadd.f32 %v2275_v34, %v1948_v20 }
 0x9db   :  { %v1961_v45 = vadd.f32 %v2275_v34, %v1946_v39  ;;  %v1964_v46 = vadd.f32 %v2275_v34, %v1949_v40  ;;  %v1966_v57 = vadd.f32 %v2275_v34, %v1951_v47  ;;  %v1967_v58 = vadd.f32 %v2275_v34, %v1952_v50 }
 0x9dc   :  { %v1968_v48 = vmax.f32 %v1960_v42, 0.0  ;;  %v1970_v49 = vmax.f32 %v1962_v43, 0.0  ;;  %v1971_v51 = vmax.f32 %v1963_v44, 0.0  ;;  %v1973_v52 = vmax.f32 %v1965_v41, 0.0 }
 0x9dd   :  { %v1969_v53 = vmax.f32 %v1961_v45, 0.0  ;;  %v1972_v54 = vmax.f32 %v1964_v46, 0.0  ;;  %v1974_v59 = vmax.f32 %v1966_v57, 0.0  ;;  %v1975_v61 = vmax.f32 %v1967_v58, 0.0 }
 0x9de   :  { %v1977_v55 = vpack.c.bf16 %v1971_v51, %v1970_v49 }
 0x9df   :  { %v1976_v56 = vpack.c.bf16 %v1969_v53, %v1968_v48  ;;  %v1978_v60 = vpack.c.bf16 %v1973_v52, %v1972_v54  ;;  %v1979_v63 = vpack.c.bf16 %v1975_v61, %v1974_v59 }
 0x9e1   :  { %2536 = vmatprep.mubr.msk.bf16.mxu1 %vm252_vm1, %v1976_v56 }
 0x9e2   :  { %2537 = vmatmul.mubr.msk.bf16.vlgmr.msra.gmra.mxu1 %vm252_vm1, %v1977_v55 }
 0x9e3   :  { %2540 = vmatprep.mubr.msk.bf16.mxu1 %vm252_vm1, %v1978_v60 }
 0x9ea   :  { %2541 = vmatmul.mubr.msk.bf16.gmra.mxu1 %vm252_vm1, %v1979_v63 }
 0xaa2   :  { %v2538_v1 = vpop.f32.mrf.mxu1 }
 0xaa3   :  { %v2058_v2 = vadd.f32 %v2538_v1, %v2276_v0 }
 0xaa4   :  { %v2049_v3 = vpop.f32.mrf.mxu1 }
 0xaa5   :  { %v2082_v4 = vsub.f32 0.0, %v2058_v2  ;;  %v2050_v6 = vadd.f32 %v2276_v0, %v2049_v3 }
 0xaa6   :  { %v2539_v5 = vpop.f32.mrf.mxu1 }
 0xaa7   :  { %v2092_v7 = vmul.f32 1.442695, %v2082_v4  ;;  %v2080_v8 = vsub.f32 0.0, %v2050_v6  ;;  %v2061_v9 = vadd.f32 %v2539_v5, %v2276_v0 }
 0xaa8   :  { %v2052_v10 = vpop.f32.mrf.mxu1 }
 0xaa9   :  { %2614 = vpow2.f32 %v2092_v7  ;;  %v2088_v14 = vmul.f32 1.442695, %v2080_v8  ;;  %v2083_v62 = vsub.f32 0.0, %v2061_v9  ;;  %v2053_v15 = vadd.f32 %v2276_v0, %v2052_v10 }
 0xaaa   :  { %v2542_v17 = vpop.f32.mrf.mxu1 }
 0xaab   :  { %2616 = vpow2.f32 %v2088_v14  ;;  %v2094_v16 = vmul.f32 1.442695, %v2083_v62  ;;  %v2081_v11 = vsub.f32 0.0, %v2053_v15  ;;  %v2074_v24 = vadd.f32 %v2542_v17, %v2276_v0 }
 0xaac   :  { %v2065_v25 = vpop.f32.mrf.mxu1 }
 0xaad   :  { %2618 = vpow2.f32 %v2094_v16  ;;  %v2090_v26 = vmul.f32 1.442695, %v2081_v11  ;;  %v2086_v27 = vsub.f32 0.0, %v2074_v24  ;;  %v2066_v28 = vadd.f32 %v2276_v0, %v2065_v25 }
 0xaae   :  { %v2543_v29 = vpop.f32.mrf.mxu1 }
 0xaaf   :  { %2620 = vpow2.f32 %v2090_v26  ;;  %v2100_v30 = vmul.f32 1.442695, %v2086_v27  ;;  %v2084_v31 = vsub.f32 0.0, %v2066_v28  ;;  %v2077_v12 = vadd.f32 %v2543_v29, %v2276_v0 }
 0xab0   :  { %v2068_v18 = vpop.f32.mrf.mxu1 }
 0xab1   :  { %2622 = vpow2.f32 %v2100_v30  ;;  %v2096_v13 = vmul.f32 1.442695, %v2084_v31  ;;  %v2087_v19 = vsub.f32 0.0, %v2077_v12  ;;  %v2069_v32 = vadd.f32 %v2276_v0, %v2068_v18 }
 0xab3   :  { %2624 = vpow2.f32 %v2096_v13  ;;  %v2102_v33 = vmul.f32 1.442695, %v2087_v19  ;;  %v2085_v34 = vsub.f32 0.0, %v2069_v32 }
 0xab5   :  { %2626 = vpow2.f32 %v2102_v33  ;;  %v2098_v35 = vmul.f32 1.442695, %v2085_v34 }
 0xab6   :  { %v2615_v36 = vpop.eup %2614 }
 0xab7   :  { %v2106_v37 = vadd.f32 1.0, %v2615_v36  ;;  %2628 = vpow2.f32 %v2098_v35 }
 0xab8   :  { %v2617_v38 = vpop.eup %2616 }
 0xab9   :  { %2630 = vrcp.f32 %v2106_v37  ;;  %v2104_v20 = vadd.f32 1.0, %v2617_v38 }
 0xaba   :  { %v2619_v21 = vpop.eup %2618 }
 0xabb   :  { %2632 = vrcp.f32 %v2104_v20  ;;  %v2107_v22 = vadd.f32 1.0, %v2619_v21 }
 0xabc   :  { %v2621_v23 = vpop.eup %2620 }
 0xabd   :  { %2634 = vrcp.f32 %v2107_v22  ;;  %v2105_v39 = vadd.f32 1.0, %v2621_v23 }
 0xabe   :  { %v2623_v40 = vpop.eup %2622 }
 0xabf   :  { %2636 = vrcp.f32 %v2105_v39  ;;  %v2110_v41 = vadd.f32 1.0, %v2623_v40 }
 0xac0   :  { %v2625_v42 = vpop.eup %2624 }
 0xac1   :  { %2638 = vrcp.f32 %v2110_v41  ;;  %v2108_v43 = vadd.f32 1.0, %v2625_v42 }
 0xac2   :  { %v2627_v44 = vpop.eup %2626 }
 0xac3   :  { %2640 = vrcp.f32 %v2108_v43  ;;  %v2111_v45 = vadd.f32 1.0, %v2627_v44 }
 0xac4   :  { %v2629_v46 = vpop.eup %2628 }
 0xac5   :  { %2642 = vrcp.f32 %v2111_v45  ;;  %v2109_v47 = vadd.f32 1.0, %v2629_v46 }
 0xac6   :  { %v2631_v48 = vpop.eup %2630 }
 0xac7   :  { %v2122_v49 = vmax.f32 %v2631_v48, 0.0  ;;  %2644 = vrcp.f32 %v2109_v47 }
 0xac8   :  { %v2633_v51 = vpop.eup %2632 }
 0xac9   :  { %v2130_v50 = vmin.f32 %v2122_v49, 1.0  ;;  %v2120_v52 = vmax.f32 %v2633_v51, 0.0 }
 0xaca   :  { %v2635_v53 = vpop.eup %2634 }
 0xacb   :  { %2138 = vst [vmem:[%s2970_s17 + $0x10] sm:$0xff] %v2130_v50  ;;  %v2128_v54 = vmin.f32 %v2120_v52, 1.0  ;;  %v2123_v55 = vmax.f32 %v2635_v53, 0.0 }
 0xacc   :  { %v2637_v56 = vpop.eup %2636 }
 0xacd   :  { %2136 = vst [vmem:[%s2970_s17] sm:$0xff] %v2128_v54  ;;  %v2131_v57 = vmin.f32 %v2123_v55, 1.0  ;;  %v2121_v58 = vmax.f32 %v2637_v56, 0.0 }
 0xace   :  { %v2639_v60 = vpop.eup %2638 }
 0xacf   :  { %2139 = vst [vmem:[%s2970_s17 + $0x18] sm:$0xff] %v2131_v57  ;;  %v2129_v59 = vmin.f32 %v2121_v58, 1.0  ;;  %v2126_v61 = vmax.f32 %v2639_v60, 0.0 }
 0xad0   :  { %v2641_v63 = vpop.eup %2640 }
 0xad1   :  { %2137 = vst [vmem:[%s2970_s17 + $0x8] sm:$0xff] %v2129_v59  ;;  %v2134_v0 = vmin.f32 %v2126_v61, 1.0  ;;  %v2124_v1 = vmax.f32 %v2641_v63, 0.0 }
 0xad2   :  { %v2643_v2 = vpop.eup %2642 }
 0xad3   :  { %2142 = vst [vmem:[%s2970_s17 + $0x30] sm:$0xff] %v2134_v0  ;;  %v2132_v3 = vmin.f32 %v2124_v1, 1.0  ;;  %v2127_v4 = vmax.f32 %v2643_v2, 0.0 }
 0xad4   :  { %v2645_v6 = vpop.eup %2644 }
 0xad5   :  { %2140 = vst [vmem:[%s2970_s17 + $0x20] sm:$0xff] %v2132_v3  ;;  %v2135_v5 = vmin.f32 %v2127_v4, 1.0  ;;  %v2125_v7 = vmax.f32 %v2645_v6, 0.0 }
 0xad7   :  { %2143 = vst [vmem:[%s2970_s17 + $0x38] sm:$0xff] %v2135_v5  ;;  %v2133_v8 = vmin.f32 %v2125_v7, 1.0 }
 0xad9   :  { %2141 = vst [vmem:[%s2970_s17 + $0x28] sm:$0xff] %v2133_v8 }

</bundles_post_ra>
